<compile_context>
chip_gen: v7x
topology: tpu7x:2x2x1
jax: 0.10.0
libtpu: 0.0.40
codegen_flags: <defaults>
</compile_context>

<pallas_src>
import functools

import jax
import jax.numpy as jnp
from jax.experimental import pallas as pl
from jax.experimental.pallas import tpu as pltpu


def _lstm_kernel(x_ref,                       # (T*B, I)  time-major, flattened
                 win_ref,                     # (I, 8H)   Wih0 interleaved, zeros in layer-1 cols
                 ball_ref,                    # (1, 8H)   [b0 | b1] interleaved per gate
                 wbig_ref,                    # (2H, 8H)  bf16 fused recurrence weight
                 wfc_ref,                     # (1, 2H)   fc weight, zeros on layer-0 lanes
                 bfc_ref,                     # (1, 1)
                 out_ref,                     # (B, 1)
                 *, seq_len, batch, hidden, input_size):
    T, B, H, I = seq_len, batch, hidden, input_size
    f32 = jnp.float32
    G8 = 8 * H                                 # packed gate width (2 layers x 4 gates)

    # ---- layer-0 input projection for ALL timesteps, hoisted out of the
    # recurrence.  K=I is tiny, so do it as I broadcast-FMAs on the VPU
    # (exact f32, no MXU weight-load/drain).  Layer-1 gate columns of win_ref
    # are zero and ball_ref carries b1 there, so gb_all[t] is the complete
    # per-step additive term for the packed-gate recurrence.
    gb_all = jnp.broadcast_to(ball_ref[...], (T * B, G8))
    for i in range(I):
        gb_all = gb_all + x_ref[:, i:i + 1] * win_ref[i:i + 1, :]

    w_big = wbig_ref[...]                      # (2H, 8H) bf16, loaded once

    def activate(pg):
        # contiguous, 128-lane-aligned slices: sigmoid on i/f/o, tanh on g.
        i_g = jax.nn.sigmoid(pg[:, 0 * 2 * H:1 * 2 * H])
        f_g = jax.nn.sigmoid(pg[:, 1 * 2 * H:2 * 2 * H])
        g_g = jnp.tanh(pg[:, 2 * 2 * H:3 * 2 * H])
        o_g = jax.nn.sigmoid(pg[:, 3 * 2 * H:4 * 2 * H])
        return i_g, f_g, g_g, o_g

    def fused_mm(hpack):
        # ONE single-pass bf16 MXU push per timestep, K = 2H = 128.
        return jnp.dot(hpack.astype(w_big.dtype), w_big,
                       preferred_element_type=f32)          # (B, 8H)

    # lane mask keeping the layer-0 half of a packed (B, 2H) state (hoisted).
    lane = jax.lax.broadcasted_iota(jnp.int32, (1, 2 * H), 1)
    keep_l0 = lane < H

    # ---- prologue (t = 0): h0/h1/c0/c1 start at zero, so the recurrence
    # matmul is skipped entirely; the layer-1 half of this iteration is a
    # pipeline bubble and is masked back to zero.
    i_g, f_g, g_g, o_g = activate(gb_all[0:B])
    cpack = i_g * g_g
    hpack = o_g * jnp.tanh(cpack)
    cpack = jnp.where(keep_l0, cpack, 0.0)                  # [c0_0 | 0]
    hpack = jnp.where(keep_l0, hpack, 0.0)                  # [h0_0 | 0]
    mm = fused_mm(hpack)                                    # [rec0_1 | gates1pre_0]

    # ---- steady state (fully unrolled, T is small/static): iteration t
    # updates layer 0 at time t and layer 1 at time t-1 (wavefront).
    for t in range(1, T):
        pg = mm + gb_all[t * B:(t + 1) * B]                 # [gates0_t | gates1_{t-1}]
        i_g, f_g, g_g, o_g = activate(pg)
        cpack = f_g * cpack + i_g * g_g                     # [c0_t | c1_{t-1}]
        hpack = o_g * jnp.tanh(cpack)                       # [h0_t | h1_{t-1}]
        mm = fused_mm(hpack)                                # [rec0_{t+1} | gates1pre_t]

    # ---- epilogue: finish layer-1 timestep T-1 (no further matmul needed;
    # the layer-0 half of this iteration is unused).
    pg = mm + jnp.broadcast_to(ball_ref[...], (B, G8))
    i_g, f_g, g_g, o_g = activate(pg)
    cpack = f_g * cpack + i_g * g_g
    hpack = o_g * jnp.tanh(cpack)                           # [unused | h1_{T-1}]

    # ---- fc head as a lane reduction; wfc is zero on the layer-0 lanes so
    # no unaligned lane slice is needed.
    out_ref[...] = (jnp.sum(hpack * wfc_ref[...], axis=-1, keepdims=True)
                    + bfc_ref[...]).astype(out_ref.dtype)


def prepare_kernel_params(params, *, hidden_size=64):
    """One-time weight-layout transform (call once, NOT per forward)."""
    H = hidden_size

    def interleave(a, b):
        # [i f g o] blocks (width H) from a and b -> [ia ib fa fb ga gb oa ob]
        blocks = []
        for g in range(4):
            blocks.append(a[..., g * H:(g + 1) * H])
            blocks.append(b[..., g * H:(g + 1) * H])
        return jnp.concatenate(blocks, axis=-1)

    zero_h = jnp.zeros_like(params["whh1"])                  # (H, 4H)
    zero_i = jnp.zeros_like(params["wih0"])                  # (I, 4H)

    # Fused recurrence weight W_big = [[Whh0, Wih1], [0, Whh1]] with the gate
    # columns interleaved per layer; cast to bf16 once (single MXU pass).
    w_big = jnp.concatenate(
        [interleave(params["whh0"], params["wih1"]),
         interleave(zero_h, params["whh1"])], axis=0).astype(jnp.bfloat16)

    w_in = interleave(params["wih0"], zero_i)                # (I, 8H) f32
    b_all = interleave(params["b0"], params["b1"])           # (1, 8H) f32
    wfc = jnp.concatenate([jnp.zeros_like(params["wfc"]),
                           params["wfc"]], axis=-1)          # (1, 2H), layer-0 lanes zero
    return dict(w_in=w_in, b_all=b_all, w_big=w_big,
                wfc=wfc, bfc=params["bfc"])


@functools.partial(jax.jit, static_argnames=("hidden_size",))
def anomaly_detection_forward(x, kparams, *, hidden_size=64):
    """x: (B, T, I) float32 — matches the PyTorch batch_first layout."""
    B, T, I = x.shape
    H = hidden_size

    # Pure layout prep: time-major flatten so per-timestep rows are contiguous.
    x2d = jnp.transpose(x, (1, 0, 2)).reshape(T * B, I)

    kernel = functools.partial(_lstm_kernel, seq_len=T, batch=B,
                               hidden=H, input_size=I)
    vmem = functools.partial(pl.BlockSpec, memory_space=pltpu.MemorySpace.VMEM)

    return pl.pallas_call(
        kernel,
        out_shape=jax.ShapeDtypeStruct((B, 1), jnp.float32),
        in_specs=[vmem() for _ in range(6)],
        out_specs=vmem(),
    )(x2d, kparams["w_in"], kparams["b_all"], kparams["w_big"],
      kparams["wfc"], kparams["bfc"])


def init_params(key, input_size, hidden_size=64, output_size=1):
    """Deterministic init (uniform(-1/sqrt(H), 1/sqrt(H)), like PyTorch)."""
    H = hidden_size
    ks = jax.random.split(key, 12)
    s = 1.0 / jnp.sqrt(H)

    def u(k, shape):
        return jax.random.uniform(k, shape, jnp.float32, -s, s)

    # Layer 0 (input_size -> H); stored transposed (in, 4H). Gate order [i,f,g,o].
    wih0 = u(ks[0], (input_size, 4 * H))
    whh0 = u(ks[1], (H, 4 * H))
    b0 = u(ks[2], (1, 4 * H)) + u(ks[3], (1, 4 * H))   # b_ih + b_hh folded

    # Layer 1 (H -> H)
    wih1 = u(ks[4], (H, 4 * H))
    whh1 = u(ks[5], (H, 4 * H))
    b1 = u(ks[6], (1, 4 * H)) + u(ks[7], (1, 4 * H))

    # fc: Linear(H, 1); stored as a row (1, H).
    wfc = u(ks[8], (output_size, H))
    bfc = u(ks[9], (1, output_size))

    return dict(wih0=wih0, whh0=whh0, b0=b0,
                wih1=wih1, whh1=whh1, b1=b1,
                wfc=wfc, bfc=bfc)


def reference_forward(x, params, *, hidden_size=64):
    """Pure-JAX f32 reference (lax.scan, HIGHEST precision) for correctness."""
    H = hidden_size
    B = x.shape[0]
    hi = jax.lax.Precision.HIGHEST
    x_tm = jnp.transpose(x, (1, 0, 2))  # (T, B, I)

    def layer(inputs, wih, whh, b):
        def step(carry, x_t):
            h, c = carry
            g = (jnp.dot(x_t, wih, precision=hi)
                 + jnp.dot(h, whh, precision=hi) + b)
            i_g = jax.nn.sigmoid(g[:, 0 * H:1 * H])
            f_g = jax.nn.sigmoid(g[:, 1 * H:2 * H])
            g_g = jnp.tanh(g[:, 2 * H:3 * H])
            o_g = jax.nn.sigmoid(g[:, 3 * H:4 * H])
            c_n = f_g * c + i_g * g_g
            h_n = o_g * jnp.tanh(c_n)
            return (h_n, c_n), h_n

        init = (jnp.zeros((B, H), jnp.float32), jnp.zeros((B, H), jnp.float32))
        _, hs = jax.lax.scan(step, init, inputs)
        return hs  # (T, B, H)

    h_l0 = layer(x_tm, params["wih0"], params["whh0"], params["b0"])
    h_l1 = layer(h_l0, params["wih1"], params["whh1"], params["b1"])
    last = h_l1[-1]  # (B, H)
    return jnp.sum(last * params["wfc"], axis=-1, keepdims=True) + params["bfc"]


if __name__ == "__main__":
    B, T, I, H = 2, 8, 4, 64   # batch, seq, input_size, hidden_size

    key = jax.random.PRNGKey(0)
    k_x, k_p = jax.random.split(key)
    x = jax.random.normal(k_x, (B, T, I), jnp.float32)
    params = init_params(k_p, input_size=I, hidden_size=H, output_size=1)
    kparams = prepare_kernel_params(params, hidden_size=H)   # one-time prep

    out = anomaly_detection_forward(x, kparams, hidden_size=H)
    out = jax.block_until_ready(out)

    ref = reference_forward(x, params, hidden_size=H)
    assert out.shape == (B, 1)
    # Kernel runs the recurrence matmuls as single-pass bf16 on the MXU
    # (per perf review); tolerance relaxed vs the f32 HIGHEST reference.
    assert jnp.allclose(out, ref, atol=3e-2, rtol=3e-2), (out, ref)

    print("KERNEL_OK")
</pallas_src>

<mosaic_0001>
module attributes {stable_mosaic.version = 11 : i64} {
  func.func @_lstm_kernel(%arg0: memref<16x4xf32, #tpu.memory_space<vmem>>, %arg1: memref<4x512xf32, #tpu.memory_space<vmem>>, %arg2: memref<1x512xf32, #tpu.memory_space<vmem>>, %arg3: memref<128x512xbf16, #tpu.memory_space<vmem>>, %arg4: memref<1x128xf32, #tpu.memory_space<vmem>>, %arg5: memref<1x1xf32, #tpu.memory_space<vmem>>, %arg6: memref<2x1xf32, #tpu.memory_space<vmem>>) attributes {dimension_semantics = [], scalar_prefetch = 0 : i64, scratch_operands = 0 : i64, tpu.core_type = #tpu.core_type<tc>} {
    %c0 = arith.constant 0 : index
    %c0_0 = arith.constant 0 : index
    %0 = vector.load %arg2[%c0, %c0_0] : memref<1x512xf32, #tpu.memory_space<vmem>>, vector<1x512xf32>
    %1 = vector.shape_cast %0 : vector<1x512xf32> to vector<1x512xf32>
    %2 = vector.broadcast %1 : vector<1x512xf32> to vector<16x512xf32>
    %c0_1 = arith.constant 0 : index
    %c0_2 = arith.constant 0 : index
    %3 = vector.load %arg0[%c0_1, %c0_2] : memref<16x4xf32, #tpu.memory_space<vmem>>, vector<16x1xf32>
    %c0_3 = arith.constant 0 : index
    %c0_4 = arith.constant 0 : index
    %4 = vector.load %arg1[%c0_3, %c0_4] : memref<4x512xf32, #tpu.memory_space<vmem>>, vector<1x512xf32>
    %5 = vector.broadcast %3 : vector<16x1xf32> to vector<16x512xf32>
    %6 = vector.broadcast %4 : vector<1x512xf32> to vector<16x512xf32>
    %7 = arith.mulf %5, %6 : vector<16x512xf32>
    %8 = arith.addf %2, %7 : vector<16x512xf32>
    %c0_5 = arith.constant 0 : index
    %c1 = arith.constant 1 : index
    %9 = vector.load %arg0[%c0_5, %c1] : memref<16x4xf32, #tpu.memory_space<vmem>>, vector<16x1xf32>
    %c1_6 = arith.constant 1 : index
    %c0_7 = arith.constant 0 : index
    %10 = vector.load %arg1[%c1_6, %c0_7] : memref<4x512xf32, #tpu.memory_space<vmem>>, vector<1x512xf32>
    %11 = vector.broadcast %9 : vector<16x1xf32> to vector<16x512xf32>
    %12 = vector.broadcast %10 : vector<1x512xf32> to vector<16x512xf32>
    %13 = arith.mulf %11, %12 : vector<16x512xf32>
    %14 = arith.addf %8, %13 : vector<16x512xf32>
    %c0_8 = arith.constant 0 : index
    %c2 = arith.constant 2 : index
    %15 = vector.load %arg0[%c0_8, %c2] : memref<16x4xf32, #tpu.memory_space<vmem>>, vector<16x1xf32>
    %c2_9 = arith.constant 2 : index
    %c0_10 = arith.constant 0 : index
    %16 = vector.load %arg1[%c2_9, %c0_10] : memref<4x512xf32, #tpu.memory_space<vmem>>, vector<1x512xf32>
    %17 = vector.broadcast %15 : vector<16x1xf32> to vector<16x512xf32>
    %18 = vector.broadcast %16 : vector<1x512xf32> to vector<16x512xf32>
    %19 = arith.mulf %17, %18 : vector<16x512xf32>
    %20 = arith.addf %14, %19 : vector<16x512xf32>
    %c0_11 = arith.constant 0 : index
    %c3 = arith.constant 3 : index
    %21 = vector.load %arg0[%c0_11, %c3] : memref<16x4xf32, #tpu.memory_space<vmem>>, vector<16x1xf32>
    %c3_12 = arith.constant 3 : index
    %c0_13 = arith.constant 0 : index
    %22 = vector.load %arg1[%c3_12, %c0_13] : memref<4x512xf32, #tpu.memory_space<vmem>>, vector<1x512xf32>
    %23 = vector.broadcast %21 : vector<16x1xf32> to vector<16x512xf32>
    %24 = vector.broadcast %22 : vector<1x512xf32> to vector<16x512xf32>
    %25 = arith.mulf %23, %24 : vector<16x512xf32>
    %26 = arith.addf %20, %25 : vector<16x512xf32>
    %c0_14 = arith.constant 0 : index
    %c0_15 = arith.constant 0 : index
    %27 = vector.load %arg3[%c0_14, %c0_15] : memref<128x512xbf16, #tpu.memory_space<vmem>>, vector<128x512xbf16>
    %28 = tpu.iota {dimensions = array<i32: 1>} : vector<1x128xi32>
    %c64_i32 = arith.constant 64 : i32
    %29 = vector.broadcast %c64_i32 : i32 to vector<1x128xi32>
    %30 = arith.cmpi slt, %28, %29 : vector<1x128xi32>
    %31 = vector.extract_strided_slice %26 {offsets = [0, 0], sizes = [2, 512], strides = [1, 1]} : vector<16x512xf32> to vector<2x512xf32>
    %32 = vector.extract_strided_slice %31 {offsets = [0, 0], sizes = [2, 128], strides = [1, 1]} : vector<2x512xf32> to vector<2x128xf32>
    %33 = arith.negf %32 : vector<2x128xf32>
    %34 = math.exp %33 : vector<2x128xf32>
    %cst = arith.constant 1.000000e+00 : f32
    %35 = vector.broadcast %cst : f32 to vector<2x128xf32>
    %36 = arith.addf %35, %34 : vector<2x128xf32>
    %37 = arith.divf %35, %36 : vector<2x128xf32>
    %38 = vector.extract_strided_slice %31 {offsets = [0, 256], sizes = [2, 128], strides = [1, 1]} : vector<2x512xf32> to vector<2x128xf32>
    %39 = math.tanh %38 : vector<2x128xf32>
    %40 = vector.extract_strided_slice %31 {offsets = [0, 384], sizes = [2, 128], strides = [1, 1]} : vector<2x512xf32> to vector<2x128xf32>
    %41 = arith.negf %40 : vector<2x128xf32>
    %42 = math.exp %41 : vector<2x128xf32>
    %cst_16 = arith.constant 1.000000e+00 : f32
    %43 = vector.broadcast %cst_16 : f32 to vector<2x128xf32>
    %44 = arith.addf %43, %42 : vector<2x128xf32>
    %45 = arith.divf %43, %44 : vector<2x128xf32>
    %46 = arith.mulf %37, %39 : vector<2x128xf32>
    %47 = math.tanh %46 : vector<2x128xf32>
    %48 = arith.mulf %45, %47 : vector<2x128xf32>
    %cst_17 = arith.constant 0.000000e+00 : f32
    %49 = vector.shape_cast %30 : vector<1x128xi1> to vector<1x128xi1>
    %50 = vector.broadcast %49 : vector<1x128xi1> to vector<2x128xi1>
    %51 = vector.broadcast %cst_17 : f32 to vector<2x128xf32>
    %52 = arith.select %50, %46, %51 : vector<2x128xi1>, vector<2x128xf32>
    %cst_18 = arith.constant 0.000000e+00 : f32
    %53 = vector.shape_cast %30 : vector<1x128xi1> to vector<1x128xi1>
    %54 = vector.broadcast %53 : vector<1x128xi1> to vector<2x128xi1>
    %55 = vector.broadcast %cst_18 : f32 to vector<2x128xf32>
    %56 = arith.select %54, %48, %55 : vector<2x128xi1>, vector<2x128xf32>
    %57 = arith.truncf %56 : vector<2x128xf32> to vector<2x128xbf16>
    %cst_19 = arith.constant dense<0.000000e+00> : vector<2x512xf32>
    %58 = tpu.matmul %57, %27, %cst_19 {dimension_numbers = #tpu.dot_dimension_numbers<[1], [0], [0], [1], [0, 0, 1, 1], [], []>} : vector<2x128xbf16>, vector<128x512xbf16>, vector<2x512xf32> -> vector<2x512xf32>
    %59 = vector.extract_strided_slice %26 {offsets = [2, 0], sizes = [2, 512], strides = [1, 1]} : vector<16x512xf32> to vector<2x512xf32>
    %60 = arith.addf %58, %59 : vector<2x512xf32>
    %61 = vector.extract_strided_slice %60 {offsets = [0, 0], sizes = [2, 128], strides = [1, 1]} : vector<2x512xf32> to vector<2x128xf32>
    %62 = arith.negf %61 : vector<2x128xf32>
    %63 = math.exp %62 : vector<2x128xf32>
    %cst_20 = arith.constant 1.000000e+00 : f32
    %64 = vector.broadcast %cst_20 : f32 to vector<2x128xf32>
    %65 = arith.addf %64, %63 : vector<2x128xf32>
    %66 = arith.divf %64, %65 : vector<2x128xf32>
    %67 = vector.extract_strided_slice %60 {offsets = [0, 128], sizes = [2, 128], strides = [1, 1]} : vector<2x512xf32> to vector<2x128xf32>
    %68 = arith.negf %67 : vector<2x128xf32>
    %69 = math.exp %68 : vector<2x128xf32>
    %cst_21 = arith.constant 1.000000e+00 : f32
    %70 = vector.broadcast %cst_21 : f32 to vector<2x128xf32>
    %71 = arith.addf %70, %69 : vector<2x128xf32>
    %72 = arith.divf %70, %71 : vector<2x128xf32>
    %73 = vector.extract_strided_slice %60 {offsets = [0, 256], sizes = [2, 128], strides = [1, 1]} : vector<2x512xf32> to vector<2x128xf32>
    %74 = math.tanh %73 : vector<2x128xf32>
    %75 = vector.extract_strided_slice %60 {offsets = [0, 384], sizes = [2, 128], strides = [1, 1]} : vector<2x512xf32> to vector<2x128xf32>
    %76 = arith.negf %75 : vector<2x128xf32>
    %77 = math.exp %76 : vector<2x128xf32>
    %cst_22 = arith.constant 1.000000e+00 : f32
    %78 = vector.broadcast %cst_22 : f32 to vector<2x128xf32>
    %79 = arith.addf %78, %77 : vector<2x128xf32>
    %80 = arith.divf %78, %79 : vector<2x128xf32>
    %81 = arith.mulf %72, %52 : vector<2x128xf32>
    %82 = arith.mulf %66, %74 : vector<2x128xf32>
    %83 = arith.addf %81, %82 : vector<2x128xf32>
    %84 = math.tanh %83 : vector<2x128xf32>
    %85 = arith.mulf %80, %84 : vector<2x128xf32>
    %86 = arith.truncf %85 : vector<2x128xf32> to vector<2x128xbf16>
    %cst_23 = arith.constant dense<0.000000e+00> : vector<2x512xf32>
    %87 = tpu.matmul %86, %27, %cst_23 {dimension_numbers = #tpu.dot_dimension_numbers<[1], [0], [0], [1], [0, 0, 1, 1], [], []>} : vector<2x128xbf16>, vector<128x512xbf16>, vector<2x512xf32> -> vector<2x512xf32>
    %88 = vector.extract_strided_slice %26 {offsets = [4, 0], sizes = [2, 512], strides = [1, 1]} : vector<16x512xf32> to vector<2x512xf32>
    %89 = arith.addf %87, %88 : vector<2x512xf32>
    %90 = vector.extract_strided_slice %89 {offsets = [0, 0], sizes = [2, 128], strides = [1, 1]} : vector<2x512xf32> to vector<2x128xf32>
    %91 = arith.negf %90 : vector<2x128xf32>
    %92 = math.exp %91 : vector<2x128xf32>
    %cst_24 = arith.constant 1.000000e+00 : f32
    %93 = vector.broadcast %cst_24 : f32 to vector<2x128xf32>
    %94 = arith.addf %93, %92 : vector<2x128xf32>
    %95 = arith.divf %93, %94 : vector<2x128xf32>
    %96 = vector.extract_strided_slice %89 {offsets = [0, 128], sizes = [2, 128], strides = [1, 1]} : vector<2x512xf32> to vector<2x128xf32>
    %97 = arith.negf %96 : vector<2x128xf32>
    %98 = math.exp %97 : vector<2x128xf32>
    %cst_25 = arith.constant 1.000000e+00 : f32
    %99 = vector.broadcast %cst_25 : f32 to vector<2x128xf32>
    %100 = arith.addf %99, %98 : vector<2x128xf32>
    %101 = arith.divf %99, %100 : vector<2x128xf32>
    %102 = vector.extract_strided_slice %89 {offsets = [0, 256], sizes = [2, 128], strides = [1, 1]} : vector<2x512xf32> to vector<2x128xf32>
    %103 = math.tanh %102 : vector<2x128xf32>
    %104 = vector.extract_strided_slice %89 {offsets = [0, 384], sizes = [2, 128], strides = [1, 1]} : vector<2x512xf32> to vector<2x128xf32>
    %105 = arith.negf %104 : vector<2x128xf32>
    %106 = math.exp %105 : vector<2x128xf32>
    %cst_26 = arith.constant 1.000000e+00 : f32
    %107 = vector.broadcast %cst_26 : f32 to vector<2x128xf32>
    %108 = arith.addf %107, %106 : vector<2x128xf32>
    %109 = arith.divf %107, %108 : vector<2x128xf32>
    %110 = arith.mulf %101, %83 : vector<2x128xf32>
    %111 = arith.mulf %95, %103 : vector<2x128xf32>
    %112 = arith.addf %110, %111 : vector<2x128xf32>
    %113 = math.tanh %112 : vector<2x128xf32>
    %114 = arith.mulf %109, %113 : vector<2x128xf32>
    %115 = arith.truncf %114 : vector<2x128xf32> to vector<2x128xbf16>
    %cst_27 = arith.constant dense<0.000000e+00> : vector<2x512xf32>
    %116 = tpu.matmul %115, %27, %cst_27 {dimension_numbers = #tpu.dot_dimension_numbers<[1], [0], [0], [1], [0, 0, 1, 1], [], []>} : vector<2x128xbf16>, vector<128x512xbf16>, vector<2x512xf32> -> vector<2x512xf32>
    %117 = vector.extract_strided_slice %26 {offsets = [6, 0], sizes = [2, 512], strides = [1, 1]} : vector<16x512xf32> to vector<2x512xf32>
    %118 = arith.addf %116, %117 : vector<2x512xf32>
    %119 = vector.extract_strided_slice %118 {offsets = [0, 0], sizes = [2, 128], strides = [1, 1]} : vector<2x512xf32> to vector<2x128xf32>
    %120 = arith.negf %119 : vector<2x128xf32>
    %121 = math.exp %120 : vector<2x128xf32>
    %cst_28 = arith.constant 1.000000e+00 : f32
    %122 = vector.broadcast %cst_28 : f32 to vector<2x128xf32>
    %123 = arith.addf %122, %121 : vector<2x128xf32>
    %124 = arith.divf %122, %123 : vector<2x128xf32>
    %125 = vector.extract_strided_slice %118 {offsets = [0, 128], sizes = [2, 128], strides = [1, 1]} : vector<2x512xf32> to vector<2x128xf32>
    %126 = arith.negf %125 : vector<2x128xf32>
    %127 = math.exp %126 : vector<2x128xf32>
    %cst_29 = arith.constant 1.000000e+00 : f32
    %128 = vector.broadcast %cst_29 : f32 to vector<2x128xf32>
    %129 = arith.addf %128, %127 : vector<2x128xf32>
    %130 = arith.divf %128, %129 : vector<2x128xf32>
    %131 = vector.extract_strided_slice %118 {offsets = [0, 256], sizes = [2, 128], strides = [1, 1]} : vector<2x512xf32> to vector<2x128xf32>
    %132 = math.tanh %131 : vector<2x128xf32>
    %133 = vector.extract_strided_slice %118 {offsets = [0, 384], sizes = [2, 128], strides = [1, 1]} : vector<2x512xf32> to vector<2x128xf32>
    %134 = arith.negf %133 : vector<2x128xf32>
    %135 = math.exp %134 : vector<2x128xf32>
    %cst_30 = arith.constant 1.000000e+00 : f32
    %136 = vector.broadcast %cst_30 : f32 to vector<2x128xf32>
    %137 = arith.addf %136, %135 : vector<2x128xf32>
    %138 = arith.divf %136, %137 : vector<2x128xf32>
    %139 = arith.mulf %130, %112 : vector<2x128xf32>
    %140 = arith.mulf %124, %132 : vector<2x128xf32>
    %141 = arith.addf %139, %140 : vector<2x128xf32>
    %142 = math.tanh %141 : vector<2x128xf32>
    %143 = arith.mulf %138, %142 : vector<2x128xf32>
    %144 = arith.truncf %143 : vector<2x128xf32> to vector<2x128xbf16>
    %cst_31 = arith.constant dense<0.000000e+00> : vector<2x512xf32>
    %145 = tpu.matmul %144, %27, %cst_31 {dimension_numbers = #tpu.dot_dimension_numbers<[1], [0], [0], [1], [0, 0, 1, 1], [], []>} : vector<2x128xbf16>, vector<128x512xbf16>, vector<2x512xf32> -> vector<2x512xf32>
    %146 = vector.extract_strided_slice %26 {offsets = [8, 0], sizes = [2, 512], strides = [1, 1]} : vector<16x512xf32> to vector<2x512xf32>
    %147 = arith.addf %145, %146 : vector<2x512xf32>
    %148 = vector.extract_strided_slice %147 {offsets = [0, 0], sizes = [2, 128], strides = [1, 1]} : vector<2x512xf32> to vector<2x128xf32>
    %149 = arith.negf %148 : vector<2x128xf32>
    %150 = math.exp %149 : vector<2x128xf32>
    %cst_32 = arith.constant 1.000000e+00 : f32
    %151 = vector.broadcast %cst_32 : f32 to vector<2x128xf32>
    %152 = arith.addf %151, %150 : vector<2x128xf32>
    %153 = arith.divf %151, %152 : vector<2x128xf32>
    %154 = vector.extract_strided_slice %147 {offsets = [0, 128], sizes = [2, 128], strides = [1, 1]} : vector<2x512xf32> to vector<2x128xf32>
    %155 = arith.negf %154 : vector<2x128xf32>
    %156 = math.exp %155 : vector<2x128xf32>
    %cst_33 = arith.constant 1.000000e+00 : f32
    %157 = vector.broadcast %cst_33 : f32 to vector<2x128xf32>
    %158 = arith.addf %157, %156 : vector<2x128xf32>
    %159 = arith.divf %157, %158 : vector<2x128xf32>
    %160 = vector.extract_strided_slice %147 {offsets = [0, 256], sizes = [2, 128], strides = [1, 1]} : vector<2x512xf32> to vector<2x128xf32>
    %161 = math.tanh %160 : vector<2x128xf32>
    %162 = vector.extract_strided_slice %147 {offsets = [0, 384], sizes = [2, 128], strides = [1, 1]} : vector<2x512xf32> to vector<2x128xf32>
    %163 = arith.negf %162 : vector<2x128xf32>
    %164 = math.exp %163 : vector<2x128xf32>
    %cst_34 = arith.constant 1.000000e+00 : f32
    %165 = vector.broadcast %cst_34 : f32 to vector<2x128xf32>
    %166 = arith.addf %165, %164 : vector<2x128xf32>
    %167 = arith.divf %165, %166 : vector<2x128xf32>
    %168 = arith.mulf %159, %141 : vector<2x128xf32>
    %169 = arith.mulf %153, %161 : vector<2x128xf32>
    %170 = arith.addf %168, %169 : vector<2x128xf32>
    %171 = math.tanh %170 : vector<2x128xf32>
    %172 = arith.mulf %167, %171 : vector<2x128xf32>
    %173 = arith.truncf %172 : vector<2x128xf32> to vector<2x128xbf16>
    %cst_35 = arith.constant dense<0.000000e+00> : vector<2x512xf32>
    %174 = tpu.matmul %173, %27, %cst_35 {dimension_numbers = #tpu.dot_dimension_numbers<[1], [0], [0], [1], [0, 0, 1, 1], [], []>} : vector<2x128xbf16>, vector<128x512xbf16>, vector<2x512xf32> -> vector<2x512xf32>
    %175 = vector.extract_strided_slice %26 {offsets = [10, 0], sizes = [2, 512], strides = [1, 1]} : vector<16x512xf32> to vector<2x512xf32>
    %176 = arith.addf %174, %175 : vector<2x512xf32>
    %177 = vector.extract_strided_slice %176 {offsets = [0, 0], sizes = [2, 128], strides = [1, 1]} : vector<2x512xf32> to vector<2x128xf32>
    %178 = arith.negf %177 : vector<2x128xf32>
    %179 = math.exp %178 : vector<2x128xf32>
    %cst_36 = arith.constant 1.000000e+00 : f32
    %180 = vector.broadcast %cst_36 : f32 to vector<2x128xf32>
    %181 = arith.addf %180, %179 : vector<2x128xf32>
    %182 = arith.divf %180, %181 : vector<2x128xf32>
    %183 = vector.extract_strided_slice %176 {offsets = [0, 128], sizes = [2, 128], strides = [1, 1]} : vector<2x512xf32> to vector<2x128xf32>
    %184 = arith.negf %183 : vector<2x128xf32>
    %185 = math.exp %184 : vector<2x128xf32>
    %cst_37 = arith.constant 1.000000e+00 : f32
    %186 = vector.broadcast %cst_37 : f32 to vector<2x128xf32>
    %187 = arith.addf %186, %185 : vector<2x128xf32>
    %188 = arith.divf %186, %187 : vector<2x128xf32>
    %189 = vector.extract_strided_slice %176 {offsets = [0, 256], sizes = [2, 128], strides = [1, 1]} : vector<2x512xf32> to vector<2x128xf32>
    %190 = math.tanh %189 : vector<2x128xf32>
    %191 = vector.extract_strided_slice %176 {offsets = [0, 384], sizes = [2, 128], strides = [1, 1]} : vector<2x512xf32> to vector<2x128xf32>
    %192 = arith.negf %191 : vector<2x128xf32>
    %193 = math.exp %192 : vector<2x128xf32>
    %cst_38 = arith.constant 1.000000e+00 : f32
    %194 = vector.broadcast %cst_38 : f32 to vector<2x128xf32>
    %195 = arith.addf %194, %193 : vector<2x128xf32>
    %196 = arith.divf %194, %195 : vector<2x128xf32>
    %197 = arith.mulf %188, %170 : vector<2x128xf32>
    %198 = arith.mulf %182, %190 : vector<2x128xf32>
    %199 = arith.addf %197, %198 : vector<2x128xf32>
    %200 = math.tanh %199 : vector<2x128xf32>
    %201 = arith.mulf %196, %200 : vector<2x128xf32>
    %202 = arith.truncf %201 : vector<2x128xf32> to vector<2x128xbf16>
    %cst_39 = arith.constant dense<0.000000e+00> : vector<2x512xf32>
    %203 = tpu.matmul %202, %27, %cst_39 {dimension_numbers = #tpu.dot_dimension_numbers<[1], [0], [0], [1], [0, 0, 1, 1], [], []>} : vector<2x128xbf16>, vector<128x512xbf16>, vector<2x512xf32> -> vector<2x512xf32>
    %204 = vector.extract_strided_slice %26 {offsets = [12, 0], sizes = [2, 512], strides = [1, 1]} : vector<16x512xf32> to vector<2x512xf32>
    %205 = arith.addf %203, %204 : vector<2x512xf32>
    %206 = vector.extract_strided_slice %205 {offsets = [0, 0], sizes = [2, 128], strides = [1, 1]} : vector<2x512xf32> to vector<2x128xf32>
    %207 = arith.negf %206 : vector<2x128xf32>
    %208 = math.exp %207 : vector<2x128xf32>
    %cst_40 = arith.constant 1.000000e+00 : f32
    %209 = vector.broadcast %cst_40 : f32 to vector<2x128xf32>
    %210 = arith.addf %209, %208 : vector<2x128xf32>
    %211 = arith.divf %209, %210 : vector<2x128xf32>
    %212 = vector.extract_strided_slice %205 {offsets = [0, 128], sizes = [2, 128], strides = [1, 1]} : vector<2x512xf32> to vector<2x128xf32>
    %213 = arith.negf %212 : vector<2x128xf32>
    %214 = math.exp %213 : vector<2x128xf32>
    %cst_41 = arith.constant 1.000000e+00 : f32
    %215 = vector.broadcast %cst_41 : f32 to vector<2x128xf32>
    %216 = arith.addf %215, %214 : vector<2x128xf32>
    %217 = arith.divf %215, %216 : vector<2x128xf32>
    %218 = vector.extract_strided_slice %205 {offsets = [0, 256], sizes = [2, 128], strides = [1, 1]} : vector<2x512xf32> to vector<2x128xf32>
    %219 = math.tanh %218 : vector<2x128xf32>
    %220 = vector.extract_strided_slice %205 {offsets = [0, 384], sizes = [2, 128], strides = [1, 1]} : vector<2x512xf32> to vector<2x128xf32>
    %221 = arith.negf %220 : vector<2x128xf32>
    %222 = math.exp %221 : vector<2x128xf32>
    %cst_42 = arith.constant 1.000000e+00 : f32
    %223 = vector.broadcast %cst_42 : f32 to vector<2x128xf32>
    %224 = arith.addf %223, %222 : vector<2x128xf32>
    %225 = arith.divf %223, %224 : vector<2x128xf32>
    %226 = arith.mulf %217, %199 : vector<2x128xf32>
    %227 = arith.mulf %211, %219 : vector<2x128xf32>
    %228 = arith.addf %226, %227 : vector<2x128xf32>
    %229 = math.tanh %228 : vector<2x128xf32>
    %230 = arith.mulf %225, %229 : vector<2x128xf32>
    %231 = arith.truncf %230 : vector<2x128xf32> to vector<2x128xbf16>
    %cst_43 = arith.constant dense<0.000000e+00> : vector<2x512xf32>
    %232 = tpu.matmul %231, %27, %cst_43 {dimension_numbers = #tpu.dot_dimension_numbers<[1], [0], [0], [1], [0, 0, 1, 1], [], []>} : vector<2x128xbf16>, vector<128x512xbf16>, vector<2x512xf32> -> vector<2x512xf32>
    %233 = vector.extract_strided_slice %26 {offsets = [14, 0], sizes = [2, 512], strides = [1, 1]} : vector<16x512xf32> to vector<2x512xf32>
    %234 = arith.addf %232, %233 : vector<2x512xf32>
    %235 = vector.extract_strided_slice %234 {offsets = [0, 0], sizes = [2, 128], strides = [1, 1]} : vector<2x512xf32> to vector<2x128xf32>
    %236 = arith.negf %235 : vector<2x128xf32>
    %237 = math.exp %236 : vector<2x128xf32>
    %cst_44 = arith.constant 1.000000e+00 : f32
    %238 = vector.broadcast %cst_44 : f32 to vector<2x128xf32>
    %239 = arith.addf %238, %237 : vector<2x128xf32>
    %240 = arith.divf %238, %239 : vector<2x128xf32>
    %241 = vector.extract_strided_slice %234 {offsets = [0, 128], sizes = [2, 128], strides = [1, 1]} : vector<2x512xf32> to vector<2x128xf32>
    %242 = arith.negf %241 : vector<2x128xf32>
    %243 = math.exp %242 : vector<2x128xf32>
    %cst_45 = arith.constant 1.000000e+00 : f32
    %244 = vector.broadcast %cst_45 : f32 to vector<2x128xf32>
    %245 = arith.addf %244, %243 : vector<2x128xf32>
    %246 = arith.divf %244, %245 : vector<2x128xf32>
    %247 = vector.extract_strided_slice %234 {offsets = [0, 256], sizes = [2, 128], strides = [1, 1]} : vector<2x512xf32> to vector<2x128xf32>
    %248 = math.tanh %247 : vector<2x128xf32>
    %249 = vector.extract_strided_slice %234 {offsets = [0, 384], sizes = [2, 128], strides = [1, 1]} : vector<2x512xf32> to vector<2x128xf32>
    %250 = arith.negf %249 : vector<2x128xf32>
    %251 = math.exp %250 : vector<2x128xf32>
    %cst_46 = arith.constant 1.000000e+00 : f32
    %252 = vector.broadcast %cst_46 : f32 to vector<2x128xf32>
    %253 = arith.addf %252, %251 : vector<2x128xf32>
    %254 = arith.divf %252, %253 : vector<2x128xf32>
    %255 = arith.mulf %246, %228 : vector<2x128xf32>
    %256 = arith.mulf %240, %248 : vector<2x128xf32>
    %257 = arith.addf %255, %256 : vector<2x128xf32>
    %258 = math.tanh %257 : vector<2x128xf32>
    %259 = arith.mulf %254, %258 : vector<2x128xf32>
    %260 = arith.truncf %259 : vector<2x128xf32> to vector<2x128xbf16>
    %cst_47 = arith.constant dense<0.000000e+00> : vector<2x512xf32>
    %261 = tpu.matmul %260, %27, %cst_47 {dimension_numbers = #tpu.dot_dimension_numbers<[1], [0], [0], [1], [0, 0, 1, 1], [], []>} : vector<2x128xbf16>, vector<128x512xbf16>, vector<2x512xf32> -> vector<2x512xf32>
    %c0_48 = arith.constant 0 : index
    %c0_49 = arith.constant 0 : index
    %262 = vector.load %arg2[%c0_48, %c0_49] : memref<1x512xf32, #tpu.memory_space<vmem>>, vector<1x512xf32>
    %263 = vector.shape_cast %262 : vector<1x512xf32> to vector<1x512xf32>
    %264 = vector.broadcast %263 : vector<1x512xf32> to vector<2x512xf32>
    %265 = arith.addf %261, %264 : vector<2x512xf32>
    %266 = vector.extract_strided_slice %265 {offsets = [0, 0], sizes = [2, 128], strides = [1, 1]} : vector<2x512xf32> to vector<2x128xf32>
    %267 = arith.negf %266 : vector<2x128xf32>
    %268 = math.exp %267 : vector<2x128xf32>
    %cst_50 = arith.constant 1.000000e+00 : f32
    %269 = vector.broadcast %cst_50 : f32 to vector<2x128xf32>
    %270 = arith.addf %269, %268 : vector<2x128xf32>
    %271 = arith.divf %269, %270 : vector<2x128xf32>
    %272 = vector.extract_strided_slice %265 {offsets = [0, 128], sizes = [2, 128], strides = [1, 1]} : vector<2x512xf32> to vector<2x128xf32>
    %273 = arith.negf %272 : vector<2x128xf32>
    %274 = math.exp %273 : vector<2x128xf32>
    %cst_51 = arith.constant 1.000000e+00 : f32
    %275 = vector.broadcast %cst_51 : f32 to vector<2x128xf32>
    %276 = arith.addf %275, %274 : vector<2x128xf32>
    %277 = arith.divf %275, %276 : vector<2x128xf32>
    %278 = vector.extract_strided_slice %265 {offsets = [0, 256], sizes = [2, 128], strides = [1, 1]} : vector<2x512xf32> to vector<2x128xf32>
    %279 = math.tanh %278 : vector<2x128xf32>
    %280 = vector.extract_strided_slice %265 {offsets = [0, 384], sizes = [2, 128], strides = [1, 1]} : vector<2x512xf32> to vector<2x128xf32>
    %281 = arith.negf %280 : vector<2x128xf32>
    %282 = math.exp %281 : vector<2x128xf32>
    %cst_52 = arith.constant 1.000000e+00 : f32
    %283 = vector.broadcast %cst_52 : f32 to vector<2x128xf32>
    %284 = arith.addf %283, %282 : vector<2x128xf32>
    %285 = arith.divf %283, %284 : vector<2x128xf32>
    %286 = arith.mulf %277, %257 : vector<2x128xf32>
    %287 = arith.mulf %271, %279 : vector<2x128xf32>
    %288 = arith.addf %286, %287 : vector<2x128xf32>
    %289 = math.tanh %288 : vector<2x128xf32>
    %290 = arith.mulf %285, %289 : vector<2x128xf32>
    %c0_53 = arith.constant 0 : index
    %c0_54 = arith.constant 0 : index
    %291 = vector.load %arg4[%c0_53, %c0_54] : memref<1x128xf32, #tpu.memory_space<vmem>>, vector<1x128xf32>
    %292 = vector.broadcast %291 : vector<1x128xf32> to vector<2x128xf32>
    %293 = arith.mulf %290, %292 : vector<2x128xf32>
    %cst_55 = arith.constant dense<0.000000e+00> : vector<2xf32>
    %294 = vector.multi_reduction <add>, %293, %cst_55 [1] : vector<2x128xf32> to vector<2xf32>
    %295 = vector.shape_cast %294 : vector<2xf32> to vector<2x1xf32>
    %c0_56 = arith.constant 0 : index
    %c0_57 = arith.constant 0 : index
    %296 = vector.load %arg5[%c0_56, %c0_57] : memref<1x1xf32, #tpu.memory_space<vmem>>, vector<1x1xf32>
    %297 = vector.broadcast %296 : vector<1x1xf32> to vector<2x1xf32>
    %298 = arith.addf %295, %297 : vector<2x1xf32>
    %c0_58 = arith.constant 0 : index
    %c0_59 = arith.constant 0 : index
    %299 = vector.load %arg6[%c0_58, %c0_59] : memref<2x1xf32, #tpu.memory_space<vmem>>, vector<2x1xf32>
    tpu.vector_store %arg6[%c0_58, %c0_59], %298 {strides = array<i32>} : memref<2x1xf32, #tpu.memory_space<vmem>>, vector<2x1xf32>,
    return
  }
}

</mosaic_0001>

<bundles_post_ra>
// kernel: anomaly_detection_forward.1
= control target key start
LH: loop header
LB: loop body
LE: loop exit
PB: predicated region body
PF: predicated region fallthrough
CT: control target
= control target key end

     0   :  { %s2389_s0 = inlined_call_operand.vmem [shape: f32[16,4], index: 0, kind: input, shape index: {}]   ;;  %s2390_s1 = inlined_call_operand.vmem [shape: f32[4,512], index: 1, kind: input, shape index: {}]   ;;  %s2391_s2 = inlined_call_operand.vmem [shape: f32[1,512], index: 2, kind: input, shape index: {}]   ;;  %s2392_s3 = inlined_call_operand.hbm [shape: bf16[128,512], index: 3, kind: input, shape index: {}]   ;;  %s2393_s4 = inlined_call_operand.vmem [shape: f32[1,128], index: 4, kind: input, shape index: {}]   ;;  %s2394_s5 = inlined_call_operand.<no memory space> [shape: f32[1,1], index: 5, kind: input, shape index: {}]   ;;  %s2395_s6 = inlined_call_operand.vmem [shape: f32[2,1], index: 6, kind: output, shape index: {}]  }
   0x1   :  { %v11_v0 = vstv %s2394_s5 }
   0x2   :  { %12 = vst [vmem:[#allocation2] sm:$0x1] %v11_v0 }
   0x3   :  { %13 = vsyncpa [#allocation4], 0  ;;  %s1734_s23 = smov [#allocation3]   ;;  %s1710_s27 = scalar_lea.hbm %s2392_s3, 4096 }
   0x4   :  { %s25_s24 = sshll.u32 %s1734_s23, 4  ;;  %p1711_p0 = scmp.ne.s32.totalorder %s2392_s3, %s1710_s27  ;;  %s26_s24 = int_to_ptr.vmem [resolvable:$true] %s25_s24 }
   0x5   :  { %p1714_p1 = scmp.lt.u32.totalorder %s1710_s27, %s2392_s3 }
   0x7   :  { %p1716_p2 = pnand %p1714_p1, %p1711_p0 }
   0x9   :  { %1719 = shalt.err (!%p1716_p2)
}
   0xa   :  { %s1720_s5 = scalar_lea.vmem %s26_s24, 4096  ;;  %p1725_p4 = scmp.lt.s32.totalorder %s26_s24, %s26_s24 }
   0xb   :  { %p1721_p3 = scmp.ne.s32.totalorder %s26_s24, %s1720_s5  ;;  %p1726_p5 = scmp.lt.s32.totalorder %s1720_s5, %s1720_s5 }
   0xd   :  { %p1727_p6 = por %p1726_p5, %p1725_p4 }
   0xf   :  { %p1728_p7 = pnand %p1727_p6, %p1721_p3 }
  0x11   :  { %1731 = shalt.err (!%p1728_p7)
}
  0x12   :  { %s1735_s8 = smov 256   ;;  %s1736_s9 = smov 16  }
  0x13   :  { %31 = dma.hbm_to_vmem [thread:$0]  %s2392_s3, 4096, %s26_s24, [#allocation4], %s1735_s8, %s1735_s8, %s1736_s9  }
  0x14   :  { %1732 = dma.done.wait [#allocation4], 4096  }
  0x15   :  { %1733 = vsyncadd [#allocation4], 4294963200  ;;  %v1737_v1 = vmov 2   ;;  %v2396_v2 = vmov 0   ;;  %v2398_v3 = vlaneseq  ;;  %v62_v6 = vld [vmem:[%s2389_s0] sm:$0xff]  ;;  %v1739_v15 = vmov 3  }
  0x16   :  { %1485 = vset.pattern.permute.xlu1 %v1737_v1  ;;  %1483 = vset.pattern.permute.xlu0 %v2396_v2  ;;  %v1804_v7 = vld [vmem:[%s2390_s1] ss:$4 sm:$0xf]  ;;  %v1820_v11 = vld [vmem:[%s2390_s1 + $0x2] ss:$4 sm:$0xf] }
  0x17   :  { %513 = vmatprep.mubr.bf16.mxu0 %v2396_v2  ;;  %554 = vmatprep.mubr.bf16.mxu1 %v2396_v2  ;;  %v1795_v4 = vshrl.u32 %v2398_v3, 7  ;;  %v1812_v9 = vld [vmem:[%s2391_s2] sm:$0xf]  ;;  %v1740_v16 = vmov 1   ;;  %v63_v17 = vld [vmem:[%s2389_s0 + $0x8] sm:$0xff]  ;;  %vm1388_vm2 = vcmask 1041408  }
  0x18   :  { %162 = vperm.xlu1 %1485, %v62_v6   ;;  %67 = vperm.xlu0 %1483, %v62_v6   ;;  %v1828_v13 = vld [vmem:[%s2390_s1 + $0x1] ss:$4 sm:$0xf]  ;;  %v1839_v18 = vld [vmem:[%s2390_s1 + $0x3] ss:$4 sm:$0xf] }
  0x19   :  { %v48_v5 = vsub.s32 1, %v1795_v4  ;;  %v1845_v20 = vld [vmem:[#allocation3 + $0x4] ss:$16 sps:$4 sm:$0xff]   ;;  %v1847_v21 = vld [vmem:[#allocation3 + $0xc] ss:$16 sps:$4 sm:$0xff]   ;;  %v44_v52 = vsub.s32 0, %v1795_v4 }
  0x1a   :  { %2439 = vst [vmem:[#allocation7_spill] sm:$0xff] %v1845_v20  ;;  %2440 = vst [vmem:[#allocation8_spill] sm:$0xff] %v1847_v21  ;;  %v1849_v22 = vld [vmem:[#allocation3] ss:$16 sps:$4 sm:$0xff]   ;;  %v1851_v23 = vld [vmem:[#allocation3 + $0x8] ss:$16 sps:$4 sm:$0xff]   ;;  %481 = vmatprep.subr.bf16.mxu0 %v1845_v20  ;;  %522 = vmatprep.subr.bf16.mxu1 %v1847_v21 }
  0x1b   :  { %v1807_v8 = vrot.slane %v1804_v7, %v48_v5  ;;  %v1815_v10 = vrot.slane %v1812_v9, %v48_v5  ;;  %v1823_v12 = vrot.slane %v1820_v11, %v48_v5  ;;  %v1831_v14 = vrot.slane %v1828_v13, %v48_v5  ;;  %v1853_v24 = vld [vmem:[#allocation3 + $0x24] ss:$16 sps:$4 sm:$0xff]   ;;  %v1855_v25 = vld [vmem:[#allocation3 + $0x2c] ss:$16 sps:$4 sm:$0xff]   ;;  %482 = vmatpush1.bf16.msra.mxu0 %v1849_v22  ;;  %v1861_v26 = vld [vmem:[#allocation3 + $0x20] ss:$16 sps:$4 sm:$0xff]  }
  0x1c   :  { %1486 = vset.pattern.permute.xlu1 %v1739_v15  ;;  %1484 = vset.pattern.permute.xlu0 %v1740_v16  ;;  %v1842_v19 = vrot.slane %v1839_v18, %v48_v5  ;;  %v1863_v27 = vld [vmem:[#allocation3 + $0x28] ss:$16 sps:$4 sm:$0xff]   ;;  %v1867_v28 = vld [vmem:[#allocation3 + $0x44] ss:$16 sps:$4 sm:$0xff]   ;;  %v1869_v29 = vld [vmem:[#allocation3 + $0x4c] ss:$16 sps:$4 sm:$0xff]   ;;  %v79_v55 = vrot.slane %v1804_v7, %v44_v52  ;;  %v1952_v60 = vrot.slane %v1812_v9, %v44_v52 }
  0x1d   :  { %2438 = vst [vmem:[#allocation6_spill] sm:$0xff] %v1815_v10  ;;  %209 = vperm.xlu1 %1486, %v62_v6   ;;  %115 = vperm.xlu0 %1484, %v62_v6   ;;  %v1873_v30 = vld [vmem:[#allocation3 + $0x40] ss:$16 sps:$4 sm:$0xff]   ;;  %v1875_v31 = vld [vmem:[#allocation3 + $0x48] ss:$16 sps:$4 sm:$0xff]   ;;  %v56_v53 = vsub.s32 3, %v1795_v4  ;;  %v173_v6 = vrot.slane %v1820_v11, %v44_v52 }
  0x1e   :  { %523 = vmatpush1.bf16.msra.mxu1 %v1851_v23  ;;  %483 = vmatprep.subr.bf16.mxu0 %v1853_v24  ;;  %v1879_v32 = vld [vmem:[#allocation3 + $0x64] ss:$16 sps:$4 sm:$0xff]   ;;  %v1881_v33 = vld [vmem:[#allocation3 + $0x6c] ss:$16 sps:$4 sm:$0xff]   ;;  %v1885_v34 = vld [vmem:[#allocation3 + $0x60] ss:$16 sps:$4 sm:$0xff]  }
  0x1f   :  { %524 = vmatprep.subr.bf16.mxu1 %v1855_v25  ;;  %484 = vmatpush1.bf16.msra.mxu0 %v1861_v26  ;;  %v1887_v35 = vld [vmem:[#allocation3 + $0x68] ss:$16 sps:$4 sm:$0xff]   ;;  %v1891_v36 = vld [vmem:[#allocation3 + $0x84] ss:$16 sps:$4 sm:$0xff]   ;;  %v1893_v37 = vld [vmem:[#allocation3 + $0x8c] ss:$16 sps:$4 sm:$0xff]   ;;  %v91_v56 = vrot.slane %v1804_v7, %v56_v53  ;;  %v1955_v61 = vrot.slane %v1812_v9, %v56_v53  ;;  %v138_v5 = vrot.slane %v1828_v13, %v56_v53 }
  0x20   :  { %485 = vmatprep.subr.bf16.mxu0 %v1867_v28  ;;  %2441 = vst [vmem:[#allocation9_spill] sm:$0xff] %v1893_v37  ;;  %v1897_v38 = vld [vmem:[#allocation3 + $0x80] ss:$16 sps:$4 sm:$0xff]   ;;  %v1899_v39 = vld [vmem:[#allocation3 + $0x88] ss:$16 sps:$4 sm:$0xff]   ;;  %v52_v54 = vsub.s32 2, %v1795_v4  ;;  %v126_v4 = vrot.slane %v1828_v13, %v44_v52 }
  0x21   :  { %1487 = vset.pattern.permute.xlu1 %v2396_v2  ;;  %119 = vperm.xlu0 %1484, %v63_v17   ;;  %2442 = vst [vmem:[#allocation10_spill] sm:$0xff] %v1897_v38  ;;  %2443 = vst [vmem:[#allocation11_spill] sm:$0xff] %v1899_v39  ;;  %v1903_v40 = vld [vmem:[#allocation3 + $0xa4] ss:$16 sps:$4 sm:$0xff]   ;;  %v1905_v41 = vld [vmem:[#allocation3 + $0xac] ss:$16 sps:$4 sm:$0xff]  }
  0x22   :  { %72 = vperm.xlu1 %1487, %v63_v17   ;;  %525 = vmatpush1.bf16.msra.mxu1 %v1863_v27  ;;  %2444 = vst [vmem:[#allocation12_spill] sm:$0xff] %v1903_v40  ;;  %2445 = vst [vmem:[#allocation13_spill] sm:$0xff] %v1905_v41  ;;  %v1909_v42 = vld [vmem:[#allocation3 + $0xa0] ss:$16 sps:$4 sm:$0xff]   ;;  %v1911_v43 = vld [vmem:[#allocation3 + $0xa8] ss:$16 sps:$4 sm:$0xff]   ;;  %v87_v57 = vrot.slane %v1804_v7, %v52_v54  ;;  %v1964_v7 = vrot.slane %v1812_v9, %v52_v54 }
  0x23   :  { %526 = vmatprep.subr.bf16.mxu1 %v1869_v29  ;;  %486 = vmatpush1.bf16.msra.mxu0 %v1873_v30  ;;  %2446 = vst [vmem:[#allocation14_spill] sm:$0xff] %v1909_v42  ;;  %2447 = vst [vmem:[#allocation15_spill] sm:$0xff] %v1911_v43  ;;  %v1915_v44 = vld [vmem:[#allocation3 + $0xc4] ss:$16 sps:$4 sm:$0xff]   ;;  %v1917_v45 = vld [vmem:[#allocation3 + $0xcc] ss:$16 sps:$4 sm:$0xff]   ;;  %v134_v16 = vrot.slane %v1828_v13, %v52_v54 }
  0x24   :  { %487 = vmatprep.subr.bf16.mxu0 %v1879_v32  ;;  %2448 = vst [vmem:[#allocation16_spill] sm:$0xff] %v1915_v44  ;;  %2449 = vst [vmem:[#allocation17_spill] sm:$0xff] %v1917_v45  ;;  %v1921_v46 = vld [vmem:[#allocation3 + $0xc0] ss:$16 sps:$4 sm:$0xff]   ;;  %v1923_v47 = vld [vmem:[#allocation3 + $0xc8] ss:$16 sps:$4 sm:$0xff]  }
  0x25   :  { %1489 = vset.pattern.permute.xlu0 %v1739_v15  ;;  %2450 = vst [vmem:[#allocation18_spill] sm:$0xff] %v1921_v46  ;;  %2451 = vst [vmem:[#allocation19_spill] sm:$0xff] %v1923_v47  ;;  %v1927_v48 = vld [vmem:[#allocation3 + $0xe4] ss:$16 sps:$4 sm:$0xff]   ;;  %v1929_v49 = vld [vmem:[#allocation3 + $0xec] ss:$16 sps:$4 sm:$0xff]   ;;  %v185_v15 = vrot.slane %v1820_v11, %v56_v53 }
  0x26   :  { %1488 = vset.pattern.permute.xlu1 %v1737_v1  ;;  %213 = vperm.xlu0 %1489, %v63_v17   ;;  %2452 = vst [vmem:[#allocation20_spill] sm:$0xff] %v1927_v48  ;;  %2453 = vst [vmem:[#allocation21_spill] sm:$0xff] %v1929_v49  ;;  %v1933_v50 = vld [vmem:[#allocation3 + $0xe0] ss:$16 sps:$4 sm:$0xff]   ;;  %v1935_v51 = vld [vmem:[#allocation3 + $0xe8] ss:$16 sps:$4 sm:$0xff]  }
  0x27   :  { %166 = vperm.xlu1 %1488, %v63_v17   ;;  %527 = vmatpush1.bf16.msra.mxu1 %v1875_v31  ;;  %2454 = vst [vmem:[#allocation22_spill] sm:$0xff] %v1933_v50  ;;  %2455 = vst [vmem:[#allocation23_spill] sm:$0xff] %v1935_v51  ;;  %v220_v17 = vrot.slane %v1839_v18, %v44_v52  ;;  %vm1400_vm3 = vcmask 1024  }
  0x28   :  { %528 = vmatprep.subr.bf16.mxu1 %v1881_v33  ;;  %488 = vmatpush1.bf16.msra.mxu0 %v1885_v34  ;;  %2456 = vst [vmem:[#allocation24_spill] sm:$0xff] %v1952_v60  ;;  %2457 = vst [vmem:[#allocation25_spill] sm:$0xff] %v1955_v61 }
  0x29   :  { %489 = vmatprep.subr.bf16.mxu0 %v1891_v36  ;;  %2458 = vst [vmem:[#allocation26_spill] sm:$0xff] %v1964_v7 }
  0x2b   :  { %529 = vmatpush1.bf16.msra.mxu1 %v1887_v35 }
  0x2c   :  { %530 = vmatprep.subr.bf16.mxu1 %v1893_v37  ;;  %490 = vmatpush1.bf16.msra.mxu0 %v1897_v38 }
  0x2d   :  { %491 = vmatprep.subr.bf16.mxu0 %v1903_v40 }
  0x2f   :  { %531 = vmatpush1.bf16.msra.mxu1 %v1899_v39 }
  0x30   :  { %532 = vmatprep.subr.bf16.mxu1 %v1905_v41  ;;  %492 = vmatpush1.bf16.msra.mxu0 %v1909_v42 }
  0x31   :  { %493 = vmatprep.subr.bf16.mxu0 %v1915_v44 }
  0x33   :  { %533 = vmatpush1.bf16.msra.mxu1 %v1911_v43 }
  0x34   :  { %534 = vmatprep.subr.bf16.mxu1 %v1917_v45  ;;  %494 = vmatpush1.bf16.msra.mxu0 %v1921_v46  ;;  %v181_v45 = vrot.slane %v1820_v11, %v52_v54 }
  0x35   :  { %495 = vmatprep.subr.bf16.mxu0 %v1927_v48 }
  0x37   :  { %535 = vmatpush1.bf16.msra.mxu1 %v1923_v47 }
  0x38   :  { %536 = vmatprep.subr.bf16.mxu1 %v1929_v49  ;;  %496 = vmatpush1.bf16.msra.mxu0 %v1933_v50  ;;  %v232_v50 = vrot.slane %v1839_v18, %v56_v53 }
  0x39   :  { %596 = vmatprep.subr.bf16.mxu0 %v1845_v20 }
  0x3b   :  { %537 = vmatpush1.bf16.msra.mxu1 %v1935_v51 }
  0x3c   :  { %637 = vmatprep.subr.bf16.mxu1 %v1847_v21 }
  0x97   :  { %v68_v58 = vpop.permute.xlu0 %67  ;;  %v1949_v59 = vpop.permute.xlu1 %162 }
  0x98   :  { %v96_v62 = vmul.f32 %v79_v55, %v68_v58  ;;  %v97_v63 = vmul.f32 %v1807_v8, %v68_v58  ;;  %v99_v0 = vmul.f32 %v91_v56, %v68_v58  ;;  %v191_v1 = vmul.f32 %v1823_v12, %v1949_v59 }
  0x99   :  { %v98_v2 = vmul.f32 %v87_v57, %v68_v58  ;;  %v190_v13 = vmul.f32 %v173_v6, %v1949_v59  ;;  %v193_v53 = vmul.f32 %v185_v15, %v1949_v59 }
  0x9a   :  { %v104_v3 = vadd.f32 %v96_v62, %v1952_v60  ;;  %v105_v21 = vadd.f32 %v97_v63, %v1815_v10  ;;  %v107_v49 = vadd.f32 %v99_v0, %v1955_v61  ;;  %v228_v0 = vrot.slane %v1839_v18, %v52_v54 }
  0x9b   :  { %v106_v43 = vadd.f32 %v98_v2, %v1964_v7 }
  0x9c   :  { %v116_v20 = vpop.permute.xlu0 %115  ;;  %v1971_v51 = vpop.permute.xlu1 %209 }
  0x9d   :  { %v143_v9 = vmul.f32 %v126_v4, %v116_v20  ;;  %v144_v48 = vmul.f32 %v1831_v14, %v116_v20  ;;  %v146_v47 = vmul.f32 %v138_v5, %v116_v20  ;;  %v238_v52 = vmul.f32 %v1842_v19, %v1971_v51 }
  0x9e   :  { %v237_v63 = vmul.f32 %v220_v17, %v1971_v51  ;;  %v145_v42 = vmul.f32 %v134_v16, %v116_v20  ;;  %v240_v39 = vmul.f32 %v232_v50, %v1971_v51 }
  0x9f   :  { %v151_v58 = vadd.f32 %v143_v9, %v104_v3  ;;  %v152_v62 = vadd.f32 %v144_v48, %v105_v21  ;;  %v154_v46 = vadd.f32 %v146_v47, %v107_v49 }
  0xa0   :  { %v120_v44 = vpop.permute.xlu0 %119 }
  0xa1   :  { %v198_v41 = vadd.f32 %v190_v13, %v151_v58  ;;  %v73_v40 = vpop.permute.xlu1 %72  ;;  %v201_v38 = vadd.f32 %v193_v53, %v154_v46  ;;  %v147_v3 = vmul.f32 %v126_v4, %v120_v44  ;;  %v148_v21 = vmul.f32 %v1831_v14, %v120_v44 }
  0xa2   :  { %v100_v47 = vmul.f32 %v79_v55, %v73_v40  ;;  %v101_v48 = vmul.f32 %v1807_v8, %v73_v40  ;;  %v102_v11 = vmul.f32 %v87_v57, %v73_v40  ;;  %v103_v49 = vmul.f32 %v91_v56, %v73_v40 }
  0xa3   :  { %v1987_v9 = vadd.f32 %v237_v63, %v198_v41  ;;  %v149_v37 = vmul.f32 %v134_v16, %v120_v44  ;;  %v150_v18 = vmul.f32 %v138_v5, %v120_v44  ;;  %v199_v20 = vadd.f32 %v191_v1, %v152_v62 }
  0xa4   :  { %v108_v2 = vadd.f32 %v100_v47, %v1952_v60  ;;  %v109_v54 = vadd.f32 %v101_v48, %v1815_v10  ;;  %v110_v13 = vadd.f32 %v102_v11, %v1964_v7  ;;  %v111_v46 = vadd.f32 %v103_v49, %v1955_v61 }
  0xa5   :  { %v214_v4 = vpop.permute.xlu0 %213  ;;  %v1410_v14 = vmul.f32 -1.442695, %v1987_v9  ;;  %v153_v53 = vadd.f32 %v145_v42, %v106_v43  ;;  %v1996_v48 = vadd.f32 %v240_v39, %v201_v38  ;;  %v239_v38 = vmul.f32 %v228_v0, %v1971_v51 }
  0xa6   :  { %v167_v55 = vpop.permute.xlu1 %166  ;;  %v155_v8 = vadd.f32 %v147_v3, %v108_v2  ;;  %v241_v57 = vmul.f32 %v220_v17, %v214_v4  ;;  %v242_v40 = vmul.f32 %v1842_v19, %v214_v4  ;;  %v243_v41 = vmul.f32 %v228_v0, %v214_v4 }
  0xa7   :  { %v194_v56 = vmul.f32 %v173_v6, %v167_v55  ;;  %v195_v44 = vmul.f32 %v1823_v12, %v167_v55  ;;  %v196_v5 = vmul.f32 %v181_v45, %v167_v55  ;;  %v197_v1 = vmul.f32 %v185_v15, %v167_v55  ;;  %v2463_v55 = vld [vmem:[#allocation10_spill] sm:$0xff] }
  0xa8   :  { %v156_v16 = vadd.f32 %v148_v21, %v109_v54  ;;  %v157_v58 = vadd.f32 %v149_v37, %v110_v13  ;;  %v158_v62 = vadd.f32 %v150_v18, %v111_v46  ;;  %v244_v63 = vmul.f32 %v232_v50, %v214_v4 }
  0xa9   :  { %v202_v47 = vadd.f32 %v194_v56, %v155_v8  ;;  %1538 = vpow2.f32 %v1410_v14  ;;  %v192_v19 = vmul.f32 %v181_v45, %v1949_v59  ;;  %v2001_v6 = vadd.f32 %v238_v52, %v199_v20  ;;  %v2462_v14 = vld [vmem:[#allocation9_spill] sm:$0xff]  ;;  %v2464_v8 = vld [vmem:[#allocation11_spill] sm:$0xff] }
  0xaa   :  { %v203_v11 = vadd.f32 %v195_v44, %v156_v16  ;;  %v204_v3 = vadd.f32 %v196_v5, %v157_v58  ;;  %v205_v17 = vadd.f32 %v197_v1, %v158_v62  ;;  %v1411_v39 = vmul.f32 -1.442695, %v1996_v48  ;;  %v2468_v56 = vld [vmem:[#allocation15_spill] sm:$0xff]  ;;  %v2469_v44 = vld [vmem:[#allocation16_spill] sm:$0xff]  ;;  %v2470_v5 = vld [vmem:[#allocation17_spill] sm:$0xff] }
  0xab   :  { %v1999_v49 = vadd.f32 %v241_v57, %v202_v47  ;;  %v200_v42 = vadd.f32 %v192_v19, %v153_v53  ;;  %v2460_v51 = vlaneseq  ;;  %v2461_v4 = vmov 0   ;;  %v2465_v57 = vld [vmem:[#allocation12_spill] sm:$0xff]  ;;  %v2471_v1 = vld [vmem:[#allocation18_spill] sm:$0xff]  ;;  %v2472_v16 = vld [vmem:[#allocation19_spill] sm:$0xff] }
  0xac   :  { %v2003_v12 = vadd.f32 %v242_v40, %v203_v11  ;;  %v2005_v15 = vadd.f32 %v243_v41, %v204_v3  ;;  %v2007_v37 = vadd.f32 %v244_v63, %v205_v17  ;;  %1540 = vpow2.f32 %v1411_v39  ;;  %v2466_v40 = vld [vmem:[#allocation13_spill] sm:$0xff]  ;;  %v2467_v41 = vld [vmem:[#allocation14_spill] sm:$0xff]  ;;  %v2473_v58 = vld [vmem:[#allocation20_spill] sm:$0xff] }
  0xad   :  { %v2011_v43 = vadd.f32 %v239_v38, %v200_v42  ;;  %v2018_v0 = vand.u32 127, %v2460_v51  ;;  %v2474_v62 = vld [vmem:[#allocation21_spill] sm:$0xff]  ;;  %v2475_v63 = vld [vmem:[#allocation22_spill] sm:$0xff]  ;;  %v2476_v53 = vld [vmem:[#allocation23_spill] sm:$0xff]  ;;  %v473_v3 = vrot.slane %v1987_v9, 2  ;;  %v474_v38 = vrot.slane %v2001_v6, 2 }
  0xae   :  { %2459 = vst [vmem:[#allocation27_spill] sm:$0xff] %v2005_v15  ;;  %v2477_v47 = vld [vmem:[#allocation7_spill] sm:$0xff]  ;;  %v2478_v11 = vld [vmem:[#allocation8_spill] sm:$0xff]  ;;  %v476_v39 = vrot.slane %v1996_v48, 2 }
  0xaf   :  { %1542 = vtanh.f32 %v2011_v43  ;;  %vm287_vm0 = vcmp.lt.s32.totalorder %v2018_v0, 64  ;;  %v475_v17 = vrot.slane %v2011_v43, 2  ;;  %v590_v0 = vrot.slane %v2011_v43, 4 }
  0xb0   :  { %vm1444_vm1 = vmpackc.low %vm287_vm0, %vm287_vm0 }
  0xb3   :  { %v1539_v50 = vpop.eup %1538 }
  0xb4   :  { %v291_v45 = vadd.f32 1.0, %v1539_v50 }
  0xb6   :  { %1544 = vrcp.f32 %v291_v45  ;;  %v1541_v59 = vpop.eup %1540 }
  0xb7   :  { %v298_v52 = vadd.f32 1.0, %v1541_v59 }
  0xb9   :  { %v1543_v21 = vpop.eup %1542  ;;  %1546 = vrcp.f32 %v298_v52 }
  0xc0   :  { %v1545_v18 = vpop.eup %1544 }
  0xc1   :  { %v2014_v2 = vmul.f32 %v1545_v18, %v1543_v21 }
  0xc3   :  { %1548 = vtanh.f32 %v2014_v2  ;;  %v1547_v20 = vpop.eup %1546 }
  0xcd   :  { %v1549_v54 = vpop.eup %1548 }
  0xce   :  { %v303_v13 = vmul.f32 %v1549_v54, %v1547_v20 }
  0xd0   :  { %v1445_v46 = vpack.c.bf16 %v303_v13, %v303_v13 }
  0xd2   :  { %1446 = vmatmul.mubr.msk.bf16.vlgmr.msra.gmra.mrb[0].mxu0 %vm1444_vm1, %v1445_v46  ;;  %1449 = vmatmul.mubr.msk.bf16.vlgmr.msra.gmra.mrb[0].mxu1 %vm1444_vm1, %v1445_v46 }
  0xd3   :  { %597 = vmatpush1.bf16.msra.mxu0 %v1849_v22  ;;  %638 = vmatpush1.bf16.msra.mxu1 %v1851_v23 }
  0xd4   :  { %598 = vmatprep.subr.bf16.mxu0 %v1853_v24  ;;  %639 = vmatprep.subr.bf16.mxu1 %v1855_v25 }
  0xd5   :  { %628 = vmatprep.mubr.bf16.mxu0 %v2461_v4  ;;  %669 = vmatprep.mubr.bf16.mxu1 %v2461_v4 }
  0xd7   :  { %599 = vmatpush1.bf16.msra.mxu0 %v1861_v26  ;;  %640 = vmatpush1.bf16.msra.mxu1 %v1863_v27 }
  0xd8   :  { %600 = vmatprep.subr.bf16.mxu0 %v1867_v28  ;;  %641 = vmatprep.subr.bf16.mxu1 %v1869_v29 }
  0xdb   :  { %601 = vmatpush1.bf16.msra.mxu0 %v1873_v30  ;;  %642 = vmatpush1.bf16.msra.mxu1 %v1875_v31 }
  0xdc   :  { %602 = vmatprep.subr.bf16.mxu0 %v1879_v32  ;;  %643 = vmatprep.subr.bf16.mxu1 %v1881_v33 }
  0xdf   :  { %603 = vmatpush1.bf16.msra.mxu0 %v1885_v34  ;;  %644 = vmatpush1.bf16.msra.mxu1 %v1887_v35 }
  0xe0   :  { %604 = vmatprep.subr.bf16.mxu0 %v1891_v36  ;;  %645 = vmatprep.subr.bf16.mxu1 %v2462_v14 }
  0xe3   :  { %605 = vmatpush1.bf16.msra.mxu0 %v2463_v55  ;;  %646 = vmatpush1.bf16.msra.mxu1 %v2464_v8 }
  0xe4   :  { %606 = vmatprep.subr.bf16.mxu0 %v2465_v57  ;;  %647 = vmatprep.subr.bf16.mxu1 %v2466_v40 }
  0xe7   :  { %607 = vmatpush1.bf16.msra.mxu0 %v2467_v41  ;;  %648 = vmatpush1.bf16.msra.mxu1 %v2468_v56 }
  0xe8   :  { %608 = vmatprep.subr.bf16.mxu0 %v2469_v44  ;;  %649 = vmatprep.subr.bf16.mxu1 %v2470_v5 }
  0xeb   :  { %609 = vmatpush1.bf16.msra.mxu0 %v2471_v1  ;;  %650 = vmatpush1.bf16.msra.mxu1 %v2472_v16 }
  0xec   :  { %610 = vmatprep.subr.bf16.mxu0 %v2473_v58  ;;  %651 = vmatprep.subr.bf16.mxu1 %v2474_v62 }
  0xef   :  { %611 = vmatpush1.bf16.msra.mxu0 %v2475_v63  ;;  %652 = vmatpush1.bf16.msra.mxu1 %v2476_v53 }
  0xf0   :  { %711 = vmatprep.subr.bf16.mxu0 %v2477_v47  ;;  %752 = vmatprep.subr.bf16.mxu1 %v2478_v11 }
 0x1a5   :  { %v515_v19 = vpop.f32.mrb[0].mxu0  ;;  %v556_v42 = vpop.f32.mrb[0].mxu1 }
 0x1a6   :  { %v516_v50 = vadd.f32 %v515_v19, %v473_v3  ;;  %v557_v45 = vadd.f32 %v556_v42, %v475_v17  ;;  %v517_v59 = vpop.f32.mrb[1].mxu0  ;;  %v558_v52 = vpop.f32.mrb[1].mxu1 }
 0x1a7   :  { %v518_v21 = vadd.f32 %v517_v59, %v474_v38  ;;  %v559_v18 = vadd.f32 %v558_v52, %v476_v39  ;;  %v519_v51 = vpop.f32.mrb[2].mxu0  ;;  %v560_v20 = vpop.f32.mrb[2].mxu1  ;;  %v306_v39 = vsel %vm287_vm0, %v2014_v2, 0.0  ;;  %v588_v2 = vrot.slane %v1987_v9, 4 }
 0x1a8   :  { %v1450_v54 = vmul.f32 -1.442695, %v516_v50  ;;  %v520_v13 = vpop.f32.mrb[3].mxu0  ;;  %v561_v46 = vpop.f32.mrb[3].mxu1  ;;  %v591_v51 = vrot.slane %v1996_v48, 4 }
 0x1a9   :  { %v1451_v7 = vmul.f32 -1.442695, %v518_v21  ;;  %v1452_v61 = vmul.f32 -1.442695, %v559_v18  ;;  %v589_v18 = vrot.slane %v2001_v6, 4 }
 0x1aa   :  { %1550 = vpow2.f32 %v1450_v54 }
 0x1ab   :  { %1552 = vpow2.f32 %v1451_v7 }
 0x1ac   :  { %1554 = vpow2.f32 %v1452_v61 }
 0x1ad   :  { %1556 = vtanh.f32 %v557_v45 }
 0x1b4   :  { %v1551_v10 = vpop.eup %1550 }
 0x1b5   :  { %v1553_v60 = vpop.eup %1552  ;;  %v566_v15 = vadd.f32 1.0, %v1551_v10 }
 0x1b6   :  { %v572_v3 = vadd.f32 1.0, %v1553_v60  ;;  %v1555_v17 = vpop.eup %1554 }
 0x1b7   :  { %1558 = vrcp.f32 %v566_v15  ;;  %v1557_v19 = vpop.eup %1556  ;;  %v579_v59 = vadd.f32 1.0, %v1555_v17 }
 0x1b8   :  { %1560 = vrcp.f32 %v572_v3 }
 0x1b9   :  { %1562 = vrcp.f32 %v579_v59 }
 0x1c1   :  { %v1559_v42 = vpop.eup %1558 }
 0x1c2   :  { %v1561_v38 = vpop.eup %1560  ;;  %v583_v50 = vmul.f32 %v1559_v42, %v1557_v19 }
 0x1c3   :  { %v582_v7 = vmul.f32 %v1561_v38, %v306_v39  ;;  %v1563_v10 = vpop.eup %1562 }
 0x1c5   :  { %v2065_v52 = vadd.f32 %v583_v50, %v582_v7 }
 0x1c7   :  { %1564 = vtanh.f32 %v2065_v52 }
 0x1d1   :  { %v1565_v60 = vpop.eup %1564 }
 0x1d2   :  { %v586_v61 = vmul.f32 %v1565_v60, %v1563_v10 }
 0x1d4   :  { %v587_v15 = vpack.c.bf16 %v586_v61, %v586_v61 }
 0x1d6   :  { %629 = vmatmul.mubr.bf16.vlgmr.msra.gmra.mrb[4].mxu0 %v587_v15  ;;  %670 = vmatmul.mubr.bf16.vlgmr.msra.gmra.mrb[4].mxu1 %v587_v15 }
 0x1d7   :  { %712 = vmatpush1.bf16.msra.mxu0 %v1849_v22  ;;  %753 = vmatpush1.bf16.msra.mxu1 %v1851_v23 }
 0x1d8   :  { %713 = vmatprep.subr.bf16.mxu0 %v1853_v24  ;;  %754 = vmatprep.subr.bf16.mxu1 %v1855_v25 }
 0x1d9   :  { %743 = vmatprep.mubr.bf16.mxu0 %v2461_v4  ;;  %784 = vmatprep.mubr.bf16.mxu1 %v2461_v4 }
 0x1db   :  { %714 = vmatpush1.bf16.msra.mxu0 %v1861_v26  ;;  %755 = vmatpush1.bf16.msra.mxu1 %v1863_v27 }
 0x1dc   :  { %715 = vmatprep.subr.bf16.mxu0 %v1867_v28  ;;  %756 = vmatprep.subr.bf16.mxu1 %v1869_v29 }
 0x1df   :  { %716 = vmatpush1.bf16.msra.mxu0 %v1873_v30  ;;  %757 = vmatpush1.bf16.msra.mxu1 %v1875_v31 }
 0x1e0   :  { %717 = vmatprep.subr.bf16.mxu0 %v1879_v32  ;;  %758 = vmatprep.subr.bf16.mxu1 %v1881_v33 }
 0x1e3   :  { %718 = vmatpush1.bf16.msra.mxu0 %v1885_v34  ;;  %759 = vmatpush1.bf16.msra.mxu1 %v1887_v35 }
 0x1e4   :  { %719 = vmatprep.subr.bf16.mxu0 %v1891_v36  ;;  %760 = vmatprep.subr.bf16.mxu1 %v2462_v14 }
 0x1e7   :  { %720 = vmatpush1.bf16.msra.mxu0 %v2463_v55  ;;  %761 = vmatpush1.bf16.msra.mxu1 %v2464_v8 }
 0x1e8   :  { %721 = vmatprep.subr.bf16.mxu0 %v2465_v57  ;;  %762 = vmatprep.subr.bf16.mxu1 %v2466_v40 }
 0x1eb   :  { %722 = vmatpush1.bf16.msra.mxu0 %v2467_v41  ;;  %763 = vmatpush1.bf16.msra.mxu1 %v2468_v56 }
 0x1ec   :  { %723 = vmatprep.subr.bf16.mxu0 %v2469_v44  ;;  %764 = vmatprep.subr.bf16.mxu1 %v2470_v5 }
 0x1ef   :  { %724 = vmatpush1.bf16.msra.mxu0 %v2471_v1  ;;  %765 = vmatpush1.bf16.msra.mxu1 %v2472_v16 }
 0x1f0   :  { %725 = vmatprep.subr.bf16.mxu0 %v2473_v58  ;;  %766 = vmatprep.subr.bf16.mxu1 %v2474_v62 }
 0x1f3   :  { %726 = vmatpush1.bf16.msra.mxu0 %v2475_v63  ;;  %767 = vmatpush1.bf16.msra.mxu1 %v2476_v53 }
 0x1f4   :  { %818 = vmatprep.subr.bf16.mxu0 %v2477_v47  ;;  %859 = vmatprep.subr.bf16.mxu1 %v2478_v11 }
 0x2a9   :  { %v630_v45 = vpop.f32.mrb[4].mxu0  ;;  %v671_v21 = vpop.f32.mrb[4].mxu1 }
 0x2aa   :  { %v631_v20 = vadd.f32 %v630_v45, %v588_v2  ;;  %v672_v54 = vadd.f32 %v671_v21, %v590_v0  ;;  %v632_v13 = vpop.f32.mrb[5].mxu0  ;;  %v673_v46 = vpop.f32.mrb[5].mxu1 }
 0x2ab   :  { %v633_v3 = vadd.f32 %v632_v13, %v589_v18  ;;  %v674_v17 = vadd.f32 %v673_v46, %v591_v51  ;;  %v634_v19 = vpop.f32.mrb[6].mxu0  ;;  %v675_v42 = vpop.f32.mrb[6].mxu1 }
 0x2ac   :  { %v1453_v38 = vmul.f32 -1.442695, %v631_v20  ;;  %v635_v39 = vpop.f32.mrb[7].mxu0  ;;  %v676_v50 = vpop.f32.mrb[7].mxu1  ;;  %v705_v19 = vrot.slane %v2011_v43, 6 }
 0x2ad   :  { %v1454_v59 = vmul.f32 -1.442695, %v633_v3  ;;  %v1455_v7 = vmul.f32 -1.442695, %v674_v17  ;;  %v704_v39 = vrot.slane %v2001_v6, 6  ;;  %v706_v50 = vrot.slane %v1996_v48, 6 }
 0x2ae   :  { %1566 = vpow2.f32 %v1453_v38 }
 0x2af   :  { %1568 = vpow2.f32 %v1454_v59 }
 0x2b0   :  { %1570 = vpow2.f32 %v1455_v7 }
 0x2b1   :  { %1572 = vtanh.f32 %v672_v54 }
 0x2b8   :  { %v1567_v10 = vpop.eup %1566 }
 0x2b9   :  { %v1569_v60 = vpop.eup %1568  ;;  %v681_v61 = vadd.f32 1.0, %v1567_v10 }
 0x2ba   :  { %v687_v15 = vadd.f32 1.0, %v1569_v60  ;;  %v1571_v2 = vpop.eup %1570 }
 0x2bb   :  { %1574 = vrcp.f32 %v681_v61  ;;  %v1573_v0 = vpop.eup %1572  ;;  %v694_v51 = vadd.f32 1.0, %v1571_v2 }
 0x2bc   :  { %1576 = vrcp.f32 %v687_v15 }
 0x2bd   :  { %1578 = vrcp.f32 %v694_v51 }
 0x2c5   :  { %v1575_v45 = vpop.eup %1574 }
 0x2c6   :  { %v1577_v21 = vpop.eup %1576  ;;  %v698_v18 = vmul.f32 %v1575_v45, %v1573_v0 }
 0x2c7   :  { %v697_v20 = vmul.f32 %v1577_v21, %v2065_v52  ;;  %v1579_v46 = vpop.eup %1578  ;;  %v703_v52 = vrot.slane %v1987_v9, 6 }
 0x2c9   :  { %v2107_v13 = vadd.f32 %v698_v18, %v697_v20 }
 0x2cb   :  { %1580 = vtanh.f32 %v2107_v13 }
 0x2d5   :  { %v1581_v3 = vpop.eup %1580 }
 0x2d6   :  { %v701_v17 = vmul.f32 %v1581_v3, %v1579_v46 }
 0x2d8   :  { %v702_v54 = vpack.c.bf16 %v701_v17, %v701_v17 }
 0x2da   :  { %744 = vmatmul.mubr.bf16.vlgmr.msra.gmra.mrb[8].mxu0 %v702_v54  ;;  %785 = vmatmul.mubr.bf16.vlgmr.msra.gmra.mrb[8].mxu1 %v702_v54 }
 0x2db   :  { %819 = vmatpush1.bf16.msra.mxu0 %v1849_v22  ;;  %860 = vmatpush1.bf16.msra.mxu1 %v1851_v23 }
 0x2dc   :  { %820 = vmatprep.subr.bf16.mxu0 %v1853_v24  ;;  %861 = vmatprep.subr.bf16.mxu1 %v1855_v25 }
 0x2dd   :  { %850 = vmatprep.mubr.bf16.mxu0 %v2461_v4  ;;  %891 = vmatprep.mubr.bf16.mxu1 %v2461_v4 }
 0x2df   :  { %821 = vmatpush1.bf16.msra.mxu0 %v1861_v26  ;;  %862 = vmatpush1.bf16.msra.mxu1 %v1863_v27 }
 0x2e0   :  { %822 = vmatprep.subr.bf16.mxu0 %v1867_v28  ;;  %863 = vmatprep.subr.bf16.mxu1 %v1869_v29 }
 0x2e3   :  { %823 = vmatpush1.bf16.msra.mxu0 %v1873_v30  ;;  %864 = vmatpush1.bf16.msra.mxu1 %v1875_v31 }
 0x2e4   :  { %824 = vmatprep.subr.bf16.mxu0 %v1879_v32  ;;  %865 = vmatprep.subr.bf16.mxu1 %v1881_v33 }
 0x2e7   :  { %825 = vmatpush1.bf16.msra.mxu0 %v1885_v34  ;;  %866 = vmatpush1.bf16.msra.mxu1 %v1887_v35 }
 0x2e8   :  { %826 = vmatprep.subr.bf16.mxu0 %v1891_v36  ;;  %867 = vmatprep.subr.bf16.mxu1 %v2462_v14 }
 0x2eb   :  { %827 = vmatpush1.bf16.msra.mxu0 %v2463_v55  ;;  %868 = vmatpush1.bf16.msra.mxu1 %v2464_v8 }
 0x2ec   :  { %828 = vmatprep.subr.bf16.mxu0 %v2465_v57  ;;  %869 = vmatprep.subr.bf16.mxu1 %v2466_v40 }
 0x2ef   :  { %829 = vmatpush1.bf16.msra.mxu0 %v2467_v41  ;;  %870 = vmatpush1.bf16.msra.mxu1 %v2468_v56 }
 0x2f0   :  { %830 = vmatprep.subr.bf16.mxu0 %v2469_v44  ;;  %871 = vmatprep.subr.bf16.mxu1 %v2470_v5 }
 0x2f3   :  { %831 = vmatpush1.bf16.msra.mxu0 %v2471_v1  ;;  %872 = vmatpush1.bf16.msra.mxu1 %v2472_v16 }
 0x2f4   :  { %832 = vmatprep.subr.bf16.mxu0 %v2473_v58  ;;  %873 = vmatprep.subr.bf16.mxu1 %v2474_v62 }
 0x2f7   :  { %833 = vmatpush1.bf16.msra.mxu0 %v2475_v63  ;;  %874 = vmatpush1.bf16.msra.mxu1 %v2476_v53 }
 0x2f8   :  { %937 = vmatprep.subr.bf16.mxu0 %v2477_v47  ;;  %978 = vmatprep.subr.bf16.mxu1 %v2478_v11 }
 0x3ad   :  { %v745_v42 = vpop.f32.mrb[8].mxu0  ;;  %v786_v38 = vpop.f32.mrb[8].mxu1 }
 0x3ae   :  { %v746_v59 = vadd.f32 %v745_v42, %v703_v52  ;;  %v787_v7 = vadd.f32 %v786_v38, %v705_v19  ;;  %v747_v10 = vpop.f32.mrb[9].mxu0  ;;  %v788_v60 = vpop.f32.mrb[9].mxu1 }
 0x3af   :  { %v748_v61 = vadd.f32 %v747_v10, %v704_v39  ;;  %v789_v15 = vadd.f32 %v788_v60, %v706_v50  ;;  %v749_v2 = vpop.f32.mrb[10].mxu0  ;;  %v790_v0 = vpop.f32.mrb[10].mxu1 }
 0x3b0   :  { %v1456_v45 = vmul.f32 -1.442695, %v746_v59  ;;  %v750_v21 = vpop.f32.mrb[11].mxu0  ;;  %v791_v18 = vpop.f32.mrb[11].mxu1 }
 0x3b1   :  { %v1457_v9 = vmul.f32 -1.442695, %v748_v61  ;;  %v1458_v43 = vmul.f32 -1.442695, %v789_v15 }
 0x3b2   :  { %1582 = vpow2.f32 %v1456_v45 }
 0x3b3   :  { %1584 = vpow2.f32 %v1457_v9 }
 0x3b4   :  { %1586 = vpow2.f32 %v1458_v43 }
 0x3b5   :  { %1588 = vtanh.f32 %v787_v7 }
 0x3bc   :  { %v1583_v51 = vpop.eup %1582 }
 0x3bd   :  { %v1585_v20 = vpop.eup %1584  ;;  %v796_v6 = vadd.f32 1.0, %v1583_v51 }
 0x3be   :  { %v802_v48 = vadd.f32 1.0, %v1585_v20  ;;  %v1587_v46 = vpop.eup %1586 }
 0x3bf   :  { %1590 = vrcp.f32 %v796_v6  ;;  %v1589_v3 = vpop.eup %1588  ;;  %v809_v19 = vadd.f32 1.0, %v1587_v46 }
 0x3c0   :  { %1592 = vrcp.f32 %v802_v48 }
 0x3c1   :  { %1594 = vrcp.f32 %v809_v19 }
 0x3c9   :  { %v1591_v17 = vpop.eup %1590 }
 0x3ca   :  { %v1593_v54 = vpop.eup %1592  ;;  %v813_v52 = vmul.f32 %v1591_v17, %v1589_v3 }
 0x3cb   :  { %v812_v42 = vmul.f32 %v1593_v54, %v2107_v13  ;;  %v1595_v39 = vpop.eup %1594 }
 0x3cd   :  { %v2149_v38 = vadd.f32 %v813_v52, %v812_v42 }
 0x3cf   :  { %1596 = vtanh.f32 %v2149_v38 }
 0x3d9   :  { %v1597_v50 = vpop.eup %1596 }
 0x3da   :  { %v816_v59 = vmul.f32 %v1597_v50, %v1595_v39 }
 0x3dc   :  { %v817_v7 = vpack.c.bf16 %v816_v59, %v816_v59 }
 0x3de   :  { %851 = vmatmul.mubr.bf16.vlgmr.msra.gmra.mrb[12].mxu0 %v817_v7  ;;  %892 = vmatmul.mubr.bf16.vlgmr.msra.gmra.mrb[12].mxu1 %v817_v7 }
 0x3df   :  { %938 = vmatpush1.bf16.msra.mxu0 %v1849_v22  ;;  %979 = vmatpush1.bf16.msra.mxu1 %v1851_v23 }
 0x3e0   :  { %939 = vmatprep.subr.bf16.mxu0 %v1853_v24  ;;  %980 = vmatprep.subr.bf16.mxu1 %v1855_v25 }
 0x3e1   :  { %969 = vmatprep.mubr.bf16.mxu0 %v2461_v4  ;;  %1010 = vmatprep.mubr.bf16.mxu1 %v2461_v4 }
 0x3e3   :  { %940 = vmatpush1.bf16.msra.mxu0 %v1861_v26  ;;  %981 = vmatpush1.bf16.msra.mxu1 %v1863_v27 }
 0x3e4   :  { %941 = vmatprep.subr.bf16.mxu0 %v1867_v28  ;;  %982 = vmatprep.subr.bf16.mxu1 %v1869_v29 }
 0x3e7   :  { %942 = vmatpush1.bf16.msra.mxu0 %v1873_v30  ;;  %983 = vmatpush1.bf16.msra.mxu1 %v1875_v31 }
 0x3e8   :  { %943 = vmatprep.subr.bf16.mxu0 %v1879_v32  ;;  %984 = vmatprep.subr.bf16.mxu1 %v1881_v33 }
 0x3eb   :  { %944 = vmatpush1.bf16.msra.mxu0 %v1885_v34  ;;  %985 = vmatpush1.bf16.msra.mxu1 %v1887_v35 }
 0x3ec   :  { %945 = vmatprep.subr.bf16.mxu0 %v1891_v36  ;;  %986 = vmatprep.subr.bf16.mxu1 %v2462_v14 }
 0x3ef   :  { %946 = vmatpush1.bf16.msra.mxu0 %v2463_v55  ;;  %987 = vmatpush1.bf16.msra.mxu1 %v2464_v8 }
 0x3f0   :  { %947 = vmatprep.subr.bf16.mxu0 %v2465_v57  ;;  %988 = vmatprep.subr.bf16.mxu1 %v2466_v40 }
 0x3f3   :  { %948 = vmatpush1.bf16.msra.mxu0 %v2467_v41  ;;  %989 = vmatpush1.bf16.msra.mxu1 %v2468_v56 }
 0x3f4   :  { %949 = vmatprep.subr.bf16.mxu0 %v2469_v44  ;;  %990 = vmatprep.subr.bf16.mxu1 %v2470_v5 }
 0x3f7   :  { %950 = vmatpush1.bf16.msra.mxu0 %v2471_v1  ;;  %991 = vmatpush1.bf16.msra.mxu1 %v2472_v16 }
 0x3f8   :  { %951 = vmatprep.subr.bf16.mxu0 %v2473_v58  ;;  %992 = vmatprep.subr.bf16.mxu1 %v2474_v62 }
 0x3fb   :  { %952 = vmatpush1.bf16.msra.mxu0 %v2475_v63  ;;  %993 = vmatpush1.bf16.msra.mxu1 %v2476_v53 }
 0x3fc   :  { %1052 = vmatprep.subr.bf16.mxu0 %v2477_v47  ;;  %1093 = vmatprep.subr.bf16.mxu1 %v2478_v11  ;;  %v2479_v11 = vld [vmem:[#allocation27_spill] sm:$0xff] }
 0x4b1   :  { %v852_v13 = vpop.f32.mrb[12].mxu0  ;;  %v893_v10 = vpop.f32.mrb[12].mxu1 }
 0x4b2   :  { %v853_v60 = vadd.f32 %v852_v13, %v1999_v49  ;;  %v854_v61 = vpop.f32.mrb[13].mxu0  ;;  %v895_v15 = vpop.f32.mrb[13].mxu1  ;;  %v894_v20 = vadd.f32 %v893_v10, %v2479_v11 }
 0x4b3   :  { %v855_v2 = vadd.f32 %v854_v61, %v2003_v12  ;;  %v856_v0 = vpop.f32.mrb[14].mxu0  ;;  %v897_v45 = vpop.f32.mrb[14].mxu1  ;;  %v896_v47 = vadd.f32 %v895_v15, %v2007_v37 }
 0x4b4   :  { %v1459_v21 = vmul.f32 -1.442695, %v853_v60  ;;  %v857_v18 = vpop.f32.mrb[15].mxu0  ;;  %v898_v9 = vpop.f32.mrb[15].mxu1 }
 0x4b5   :  { %v1460_v43 = vmul.f32 -1.442695, %v855_v2  ;;  %v1461_v51 = vmul.f32 -1.442695, %v896_v47  ;;  %v2240_v18 = vld [vmem:[#allocation3] ss:$16 sps:$4 sm:$0xff]  }
 0x4b6   :  { %1598 = vpow2.f32 %v1459_v21  ;;  %v2243_v9 = vld [vmem:[#allocation3 + $0x8] ss:$16 sps:$4 sm:$0xff]   ;;  %v2249_v47 = vld [vmem:[#allocation3 + $0x2c] ss:$16 sps:$4 sm:$0xff]  }
 0x4b7   :  { %1600 = vpow2.f32 %v1460_v43  ;;  %v2246_v43 = vld [vmem:[#allocation3 + $0x24] ss:$16 sps:$4 sm:$0xff]  }
 0x4b8   :  { %1602 = vpow2.f32 %v1461_v51  ;;  %v2254_v51 = vld [vmem:[#allocation3 + $0x20] ss:$16 sps:$4 sm:$0xff]  }
 0x4b9   :  { %1604 = vtanh.f32 %v894_v20  ;;  %v2257_v20 = vld [vmem:[#allocation3 + $0x28] ss:$16 sps:$4 sm:$0xff]  }
 0x4c0   :  { %v1599_v6 = vpop.eup %1598 }
 0x4c1   :  { %v1601_v48 = vpop.eup %1600  ;;  %v903_v46 = vadd.f32 1.0, %v1599_v6  ;;  %v2260_v6 = vld [vmem:[#allocation3 + $0x44] ss:$16 sps:$4 sm:$0xff]  }
 0x4c2   :  { %v909_v3 = vadd.f32 1.0, %v1601_v48  ;;  %v1603_v17 = vpop.eup %1602  ;;  %v2263_v48 = vld [vmem:[#allocation3 + $0x4c] ss:$16 sps:$4 sm:$0xff]  }
 0x4c3   :  { %1606 = vrcp.f32 %v903_v46  ;;  %v1605_v54 = vpop.eup %1604  ;;  %v916_v39 = vadd.f32 1.0, %v1603_v17  ;;  %v2266_v46 = vld [vmem:[#allocation3 + $0x40] ss:$16 sps:$4 sm:$0xff]   ;;  %v2272_v17 = vld [vmem:[#allocation3 + $0x64] ss:$16 sps:$4 sm:$0xff]  }
 0x4c4   :  { %1608 = vrcp.f32 %v909_v3  ;;  %v2269_v3 = vld [vmem:[#allocation3 + $0x48] ss:$16 sps:$4 sm:$0xff]  }
 0x4c5   :  { %1610 = vrcp.f32 %v916_v39  ;;  %v2287_v39 = vld [vmem:[#allocation3 + $0x8c] ss:$16 sps:$4 sm:$0xff]  }
 0x4cd   :  { %v1607_v52 = vpop.eup %1606 }
 0x4ce   :  { %v1609_v19 = vpop.eup %1608  ;;  %v920_v42 = vmul.f32 %v1607_v52, %v1605_v54  ;;  %v2275_v54 = vld [vmem:[#allocation3 + $0x6c] ss:$16 sps:$4 sm:$0xff]   ;;  %v2278_v52 = vld [vmem:[#allocation3 + $0x60] ss:$16 sps:$4 sm:$0xff]  }
 0x4cf   :  { %v919_v50 = vmul.f32 %v1609_v19, %v2149_v38  ;;  %v1611_v7 = vpop.eup %1610  ;;  %v2281_v19 = vld [vmem:[#allocation3 + $0x68] ss:$16 sps:$4 sm:$0xff]  }
 0x4d1   :  { %v2191_v59 = vadd.f32 %v920_v42, %v919_v50  ;;  %v2284_v42 = vld [vmem:[#allocation3 + $0x84] ss:$16 sps:$4 sm:$0xff]   ;;  %v2290_v50 = vld [vmem:[#allocation3 + $0x80] ss:$16 sps:$4 sm:$0xff]  }
 0x4d3   :  { %1612 = vtanh.f32 %v2191_v59 }
 0x4dd   :  { %v1613_v13 = vpop.eup %1612 }
 0x4de   :  { %v923_v10 = vmul.f32 %v1613_v13, %v1611_v7  ;;  %v2296_v7 = vld [vmem:[#allocation3 + $0xa4] ss:$16 sps:$4 sm:$0xff]   ;;  %v2299_v13 = vld [vmem:[#allocation3 + $0xac] ss:$16 sps:$4 sm:$0xff]  }
 0x4e0   :  { %v924_v60 = vpack.c.bf16 %v923_v10, %v923_v10  ;;  %v2302_v10 = vld [vmem:[#allocation3 + $0xa0] ss:$16 sps:$4 sm:$0xff]  }
 0x4e2   :  { %970 = vmatmul.mubr.bf16.vlgmr.msra.gmra.mrb[16].mxu0 %v924_v60  ;;  %1011 = vmatmul.mubr.bf16.vlgmr.msra.gmra.mrb[16].mxu1 %v924_v60  ;;  %v2305_v60 = vld [vmem:[#allocation3 + $0xa8] ss:$16 sps:$4 sm:$0xff]  }
 0x4e3   :  { %1053 = vmatpush1.bf16.msra.mxu0 %v1849_v22  ;;  %1094 = vmatpush1.bf16.msra.mxu1 %v1851_v23  ;;  %v2226_v22 = vld [vmem:[#allocation3 + $0x4] ss:$16 sps:$4 sm:$0xff]   ;;  %v2229_v23 = vld [vmem:[#allocation3 + $0xc] ss:$16 sps:$4 sm:$0xff]  }
 0x4e4   :  { %1054 = vmatprep.subr.bf16.mxu0 %v1853_v24  ;;  %1095 = vmatprep.subr.bf16.mxu1 %v1855_v25  ;;  %v929_v24 = vrot.slane %v1999_v49, 2 }
 0x4e5   :  { %1084 = vmatprep.mubr.bf16.mxu0 %v2461_v4  ;;  %1125 = vmatprep.mubr.bf16.mxu1 %v2461_v4 }
 0x4e7   :  { %1055 = vmatpush1.bf16.msra.mxu0 %v1861_v26  ;;  %1096 = vmatpush1.bf16.msra.mxu1 %v1863_v27  ;;  %v930_v27 = vrot.slane %v2003_v12, 2 }
 0x4e8   :  { %1056 = vmatprep.subr.bf16.mxu0 %v1867_v28  ;;  %1097 = vmatprep.subr.bf16.mxu1 %v1869_v29 }
 0x4eb   :  { %1057 = vmatpush1.bf16.msra.mxu0 %v1873_v30  ;;  %1098 = vmatpush1.bf16.msra.mxu1 %v1875_v31 }
 0x4ec   :  { %1058 = vmatprep.subr.bf16.mxu0 %v1879_v32  ;;  %1099 = vmatprep.subr.bf16.mxu1 %v1881_v33 }
 0x4ef   :  { %1059 = vmatpush1.bf16.msra.mxu0 %v1885_v34  ;;  %1100 = vmatpush1.bf16.msra.mxu1 %v1887_v35 }
 0x4f0   :  { %1060 = vmatprep.subr.bf16.mxu0 %v1891_v36  ;;  %1101 = vmatprep.subr.bf16.mxu1 %v2462_v14 }
 0x4f3   :  { %1061 = vmatpush1.bf16.msra.mxu0 %v2463_v55  ;;  %1102 = vmatpush1.bf16.msra.mxu1 %v2464_v8  ;;  %v932_v55 = vrot.slane %v2007_v37, 2 }
 0x4f4   :  { %1062 = vmatprep.subr.bf16.mxu0 %v2465_v57  ;;  %1103 = vmatprep.subr.bf16.mxu1 %v2466_v40  ;;  %v931_v57 = vrot.slane %v2479_v11, 2 }
 0x4f7   :  { %1063 = vmatpush1.bf16.msra.mxu0 %v2467_v41  ;;  %1104 = vmatpush1.bf16.msra.mxu1 %v2468_v56 }
 0x4f8   :  { %1064 = vmatprep.subr.bf16.mxu0 %v2469_v44  ;;  %1105 = vmatprep.subr.bf16.mxu1 %v2470_v5 }
 0x4fb   :  { %1065 = vmatpush1.bf16.msra.mxu0 %v2471_v1  ;;  %1106 = vmatpush1.bf16.msra.mxu1 %v2472_v16 }
 0x4fc   :  { %1066 = vmatprep.subr.bf16.mxu0 %v2473_v58  ;;  %1107 = vmatprep.subr.bf16.mxu1 %v2474_v62 }
 0x4ff   :  { %1067 = vmatpush1.bf16.msra.mxu0 %v2475_v63  ;;  %1108 = vmatpush1.bf16.msra.mxu1 %v2476_v53 }
 0x500   :  { %1167 = vmatprep.subr.bf16.mxu0 %v2226_v22  ;;  %1208 = vmatprep.subr.bf16.mxu1 %v2229_v23 }
 0x5b5   :  { %v971_v25 = vpop.f32.mrb[16].mxu0  ;;  %v1012_v26 = vpop.f32.mrb[16].mxu1 }
 0x5b6   :  { %v972_v28 = vadd.f32 %v971_v25, %v929_v24  ;;  %v973_v29 = vpop.f32.mrb[17].mxu0  ;;  %v1014_v30 = vpop.f32.mrb[17].mxu1  ;;  %v1013_v41 = vadd.f32 %v1012_v26, %v931_v57  ;;  %v2308_v24 = vld [vmem:[#allocation3 + $0xc4] ss:$16 sps:$4 sm:$0xff]   ;;  %v2311_v25 = vld [vmem:[#allocation3 + $0xcc] ss:$16 sps:$4 sm:$0xff]  }
 0x5b7   :  { %v974_v31 = vadd.f32 %v973_v29, %v930_v27  ;;  %v975_v32 = vpop.f32.mrb[18].mxu0  ;;  %v1016_v33 = vpop.f32.mrb[18].mxu1  ;;  %v1015_v8 = vadd.f32 %v1014_v30, %v932_v55  ;;  %v2314_v26 = vld [vmem:[#allocation3 + $0xc0] ss:$16 sps:$4 sm:$0xff]   ;;  %v2317_v27 = vld [vmem:[#allocation3 + $0xc8] ss:$16 sps:$4 sm:$0xff]  }
 0x5b8   :  { %v1462_v34 = vmul.f32 -1.442695, %v972_v28  ;;  %v976_v35 = vpop.f32.mrb[19].mxu0  ;;  %v1017_v36 = vpop.f32.mrb[19].mxu1  ;;  %v2320_v28 = vld [vmem:[#allocation3 + $0xe4] ss:$16 sps:$4 sm:$0xff]  }
 0x5b9   :  { %v1463_v14 = vmul.f32 -1.442695, %v974_v31  ;;  %v1464_v40 = vmul.f32 -1.442695, %v1015_v8  ;;  %v2323_v29 = vld [vmem:[#allocation3 + $0xec] ss:$16 sps:$4 sm:$0xff]  }
 0x5ba   :  { %1614 = vpow2.f32 %v1462_v34  ;;  %v2326_v30 = vld [vmem:[#allocation3 + $0xe0] ss:$16 sps:$4 sm:$0xff]   ;;  %v2329_v31 = vld [vmem:[#allocation3 + $0xe8] ss:$16 sps:$4 sm:$0xff]   ;;  %v1044_v32 = vrot.slane %v1999_v49, 4  ;;  %v1045_v35 = vrot.slane %v2003_v12, 4 }
 0x5bb   :  { %1616 = vpow2.f32 %v1463_v14 }
 0x5bc   :  { %1618 = vpow2.f32 %v1464_v40 }
 0x5bd   :  { %1620 = vtanh.f32 %v1013_v41 }
 0x5c4   :  { %v1615_v56 = vpop.eup %1614 }
 0x5c5   :  { %v1617_v44 = vpop.eup %1616  ;;  %v1022_v5 = vadd.f32 1.0, %v1615_v56 }
 0x5c6   :  { %v1028_v1 = vadd.f32 1.0, %v1617_v44  ;;  %v1619_v16 = vpop.eup %1618 }
 0x5c7   :  { %1622 = vrcp.f32 %v1022_v5  ;;  %v1621_v58 = vpop.eup %1620  ;;  %v1035_v38 = vadd.f32 1.0, %v1619_v16 }
 0x5c8   :  { %1624 = vrcp.f32 %v1028_v1  ;;  %v1046_v1 = vrot.slane %v2479_v11, 4 }
 0x5c9   :  { %1626 = vrcp.f32 %v1035_v38 }
 0x5d1   :  { %v1623_v62 = vpop.eup %1622 }
 0x5d2   :  { %v1625_v63 = vpop.eup %1624  ;;  %v1039_v53 = vmul.f32 %v1623_v62, %v1621_v58 }
 0x5d3   :  { %v1038_v61 = vmul.f32 %v1625_v63, %v2191_v59  ;;  %v1627_v2 = vpop.eup %1626  ;;  %v2293_v59 = vld [vmem:[#allocation3 + $0x88] ss:$16 sps:$4 sm:$0xff]  }
 0x5d5   :  { %v2237_v15 = vadd.f32 %v1039_v53, %v1038_v61 }
 0x5d7   :  { %1628 = vtanh.f32 %v2237_v15 }
 0x5e1   :  { %v1629_v0 = vpop.eup %1628 }
 0x5e2   :  { %v1042_v45 = vmul.f32 %v1629_v0, %v1627_v2 }
 0x5e4   :  { %v1043_v21 = vpack.c.bf16 %v1042_v45, %v1042_v45 }
 0x5e6   :  { %1085 = vmatmul.mubr.bf16.vlgmr.msra.gmra.mrb[20].mxu0 %v1043_v21  ;;  %1126 = vmatmul.mubr.bf16.vlgmr.msra.gmra.mrb[20].mxu1 %v1043_v21 }
 0x5e7   :  { %1168 = vmatpush1.bf16.msra.mxu0 %v2240_v18  ;;  %1209 = vmatpush1.bf16.msra.mxu1 %v2243_v9 }
 0x5e8   :  { %1169 = vmatprep.subr.bf16.mxu0 %v2246_v43  ;;  %1210 = vmatprep.subr.bf16.mxu1 %v2249_v47 }
 0x5e9   :  { %1199 = vmatprep.mubr.bf16.mxu0 %v2461_v4  ;;  %1240 = vmatprep.mubr.bf16.mxu1 %v2461_v4 }
 0x5eb   :  { %1170 = vmatpush1.bf16.msra.mxu0 %v2254_v51  ;;  %1211 = vmatpush1.bf16.msra.mxu1 %v2257_v20 }
 0x5ec   :  { %1171 = vmatprep.subr.bf16.mxu0 %v2260_v6  ;;  %1212 = vmatprep.subr.bf16.mxu1 %v2263_v48 }
 0x5ef   :  { %1172 = vmatpush1.bf16.msra.mxu0 %v2266_v46  ;;  %1213 = vmatpush1.bf16.msra.mxu1 %v2269_v3 }
 0x5f0   :  { %1173 = vmatprep.subr.bf16.mxu0 %v2272_v17  ;;  %1214 = vmatprep.subr.bf16.mxu1 %v2275_v54 }
 0x5f3   :  { %1174 = vmatpush1.bf16.msra.mxu0 %v2278_v52  ;;  %1215 = vmatpush1.bf16.msra.mxu1 %v2281_v19 }
 0x5f4   :  { %1175 = vmatprep.subr.bf16.mxu0 %v2284_v42  ;;  %1216 = vmatprep.subr.bf16.mxu1 %v2287_v39 }
 0x5f7   :  { %1176 = vmatpush1.bf16.msra.mxu0 %v2290_v50  ;;  %1217 = vmatpush1.bf16.msra.mxu1 %v2293_v59 }
 0x5f8   :  { %1177 = vmatprep.subr.bf16.mxu0 %v2296_v7  ;;  %1218 = vmatprep.subr.bf16.mxu1 %v2299_v13 }
 0x5fb   :  { %1178 = vmatpush1.bf16.msra.mxu0 %v2302_v10  ;;  %1219 = vmatpush1.bf16.msra.mxu1 %v2305_v60 }
 0x5fc   :  { %1179 = vmatprep.subr.bf16.mxu0 %v2308_v24  ;;  %1220 = vmatprep.subr.bf16.mxu1 %v2311_v25 }
 0x5ff   :  { %1180 = vmatpush1.bf16.msra.mxu0 %v2314_v26  ;;  %1221 = vmatpush1.bf16.msra.mxu1 %v2317_v27 }
 0x600   :  { %1181 = vmatprep.subr.bf16.mxu0 %v2320_v28  ;;  %1222 = vmatprep.subr.bf16.mxu1 %v2323_v29 }
 0x603   :  { %1182 = vmatpush1.bf16.msra.mxu0 %v2326_v30  ;;  %1223 = vmatpush1.bf16.msra.mxu1 %v2329_v31 }
 0x604   :  { %1274 = vmatprep.subr.bf16.mxu0 %v2226_v22  ;;  %1315 = vmatprep.subr.bf16.mxu1 %v2229_v23  ;;  %v1047_v22 = vrot.slane %v2007_v37, 4 }
 0x6b9   :  { %v1086_v33 = vpop.f32.mrb[20].mxu0  ;;  %v1127_v34 = vpop.f32.mrb[20].mxu1 }
 0x6ba   :  { %v1087_v36 = vadd.f32 %v1086_v33, %v1044_v32  ;;  %v1088_v14 = vpop.f32.mrb[21].mxu0  ;;  %v1129_v55 = vpop.f32.mrb[21].mxu1  ;;  %v1128_v58 = vadd.f32 %v1127_v34, %v1046_v1 }
 0x6bb   :  { %v1089_v8 = vadd.f32 %v1088_v14, %v1045_v35  ;;  %v1090_v57 = vpop.f32.mrb[22].mxu0  ;;  %v1131_v40 = vpop.f32.mrb[22].mxu1  ;;  %v1130_v23 = vadd.f32 %v1129_v55, %v1047_v22 }
 0x6bc   :  { %v1465_v41 = vmul.f32 -1.442695, %v1087_v36  ;;  %v1091_v56 = vpop.f32.mrb[23].mxu0  ;;  %v1132_v44 = vpop.f32.mrb[23].mxu1  ;;  %v2480_v57 = vld [vmem:[#allocation24_spill] sm:$0xff] }
 0x6bd   :  { %v1466_v5 = vmul.f32 -1.442695, %v1089_v8  ;;  %v1467_v16 = vmul.f32 -1.442695, %v1130_v23  ;;  %v2481_v44 = vld [vmem:[#allocation6_spill] sm:$0xff] }
 0x6be   :  { %1630 = vpow2.f32 %v1465_v41 }
 0x6bf   :  { %1632 = vpow2.f32 %v1466_v5 }
 0x6c0   :  { %1634 = vpow2.f32 %v1467_v16 }
 0x6c1   :  { %1636 = vtanh.f32 %v1128_v58 }
 0x6c8   :  { %v1631_v62 = vpop.eup %1630 }
 0x6c9   :  { %v1633_v63 = vpop.eup %1632  ;;  %v1137_v53 = vadd.f32 1.0, %v1631_v62 }
 0x6ca   :  { %v1143_v38 = vadd.f32 1.0, %v1633_v63  ;;  %v1635_v61 = vpop.eup %1634  ;;  %v2482_v63 = vld [vmem:[#allocation25_spill] sm:$0xff] }
 0x6cb   :  { %1638 = vrcp.f32 %v1137_v53  ;;  %v1637_v2 = vpop.eup %1636  ;;  %v1150_v32 = vadd.f32 1.0, %v1635_v61  ;;  %v2483_v61 = vld [vmem:[#allocation26_spill] sm:$0xff] }
 0x6cc   :  { %1640 = vrcp.f32 %v1143_v38 }
 0x6cd   :  { %1642 = vrcp.f32 %v1150_v32 }
 0x6d5   :  { %v1639_v0 = vpop.eup %1638 }
 0x6d6   :  { %v1641_v45 = vpop.eup %1640  ;;  %v1154_v21 = vmul.f32 %v1639_v0, %v1637_v2 }
 0x6d7   :  { %v1153_v33 = vmul.f32 %v1641_v45, %v2237_v15  ;;  %v1643_v34 = vpop.eup %1642 }
 0x6d9   :  { %v2339_v35 = vadd.f32 %v1154_v21, %v1153_v33 }
 0x6db   :  { %1644 = vtanh.f32 %v2339_v35 }
 0x6e5   :  { %v1645_v36 = vpop.eup %1644 }
 0x6e6   :  { %v1157_v14 = vmul.f32 %v1645_v36, %v1643_v34 }
 0x6e8   :  { %v1158_v55 = vpack.c.bf16 %v1157_v14, %v1157_v14 }
 0x6ea   :  { %1200 = vmatmul.mubr.bf16.vlgmr.msra.gmra.mrb[24].mxu0 %v1158_v55  ;;  %1241 = vmatmul.mubr.bf16.vlgmr.msra.gmra.mrb[24].mxu1 %v1158_v55 }
 0x6eb   :  { %1275 = vmatpush1.bf16.msra.mxu0 %v2240_v18  ;;  %1316 = vmatpush1.bf16.msra.mxu1 %v2243_v9  ;;  %v1160_v9 = vrot.slane %v2003_v12, 6 }
 0x6ec   :  { %1276 = vmatprep.subr.bf16.mxu0 %v2246_v43  ;;  %1317 = vmatprep.subr.bf16.mxu1 %v2249_v47 }
 0x6ed   :  { %1306 = vmatprep.mubr.bf16.mxu0 %v2461_v4  ;;  %1347 = vmatprep.mubr.bf16.mxu1 %v2461_v4  ;;  %v1159_v4 = vrot.slane %v1999_v49, 6  ;;  %v1161_v49 = vrot.slane %v2479_v11, 6 }
 0x6ef   :  { %1277 = vmatpush1.bf16.msra.mxu0 %v2254_v51  ;;  %1318 = vmatpush1.bf16.msra.mxu1 %v2257_v20 }
 0x6f0   :  { %1278 = vmatprep.subr.bf16.mxu0 %v2260_v6  ;;  %1319 = vmatprep.subr.bf16.mxu1 %v2263_v48 }
 0x6f3   :  { %1279 = vmatpush1.bf16.msra.mxu0 %v2266_v46  ;;  %1320 = vmatpush1.bf16.msra.mxu1 %v2269_v3 }
 0x6f4   :  { %1280 = vmatprep.subr.bf16.mxu0 %v2272_v17  ;;  %1321 = vmatprep.subr.bf16.mxu1 %v2275_v54 }
 0x6f7   :  { %1281 = vmatpush1.bf16.msra.mxu0 %v2278_v52  ;;  %1322 = vmatpush1.bf16.msra.mxu1 %v2281_v19  ;;  %v1162_v52 = vrot.slane %v2007_v37, 6 }
 0x6f8   :  { %1282 = vmatprep.subr.bf16.mxu0 %v2284_v42  ;;  %1323 = vmatprep.subr.bf16.mxu1 %v2287_v39 }
 0x6fb   :  { %1283 = vmatpush1.bf16.msra.mxu0 %v2290_v50  ;;  %1324 = vmatpush1.bf16.msra.mxu1 %v2293_v59 }
 0x6fc   :  { %1284 = vmatprep.subr.bf16.mxu0 %v2296_v7  ;;  %1325 = vmatprep.subr.bf16.mxu1 %v2299_v13 }
 0x6ff   :  { %1285 = vmatpush1.bf16.msra.mxu0 %v2302_v10  ;;  %1326 = vmatpush1.bf16.msra.mxu1 %v2305_v60 }
 0x700   :  { %1286 = vmatprep.subr.bf16.mxu0 %v2308_v24  ;;  %1327 = vmatprep.subr.bf16.mxu1 %v2311_v25 }
 0x703   :  { %1287 = vmatpush1.bf16.msra.mxu0 %v2314_v26  ;;  %1328 = vmatpush1.bf16.msra.mxu1 %v2317_v27 }
 0x704   :  { %1288 = vmatprep.subr.bf16.mxu0 %v2320_v28  ;;  %1329 = vmatprep.subr.bf16.mxu1 %v2323_v29 }
 0x707   :  { %1289 = vmatpush1.bf16.msra.mxu0 %v2326_v30  ;;  %1330 = vmatpush1.bf16.msra.mxu1 %v2329_v31 }
 0x7bd   :  { %v1201_v15 = vpop.f32.mrb[24].mxu0  ;;  %v1242_v18 = vpop.f32.mrb[24].mxu1 }
 0x7be   :  { %v1202_v43 = vadd.f32 %v1201_v15, %v1159_v4  ;;  %v1203_v47 = vpop.f32.mrb[25].mxu0  ;;  %v1244_v51 = vpop.f32.mrb[25].mxu1  ;;  %v1243_v39 = vadd.f32 %v1242_v18, %v1161_v49 }
 0x7bf   :  { %v1204_v20 = vadd.f32 %v1203_v47, %v1160_v9  ;;  %v1205_v6 = vpop.f32.mrb[26].mxu0  ;;  %v1246_v48 = vpop.f32.mrb[26].mxu1  ;;  %v1245_v19 = vadd.f32 %v1244_v51, %v1162_v52 }
 0x7c0   :  { %v1468_v46 = vmul.f32 -1.442695, %v1202_v43  ;;  %v1206_v3 = vpop.f32.mrb[27].mxu0  ;;  %v1247_v17 = vpop.f32.mrb[27].mxu1  ;;  %v1474_v43 = vld [vmem:[%s2393_s4] ss:$0 sm:$0xff] }
 0x7c1   :  { %v1469_v54 = vmul.f32 -1.442695, %v1204_v20  ;;  %v1470_v42 = vmul.f32 -1.442695, %v1245_v19  ;;  %v1475_v6 = vld [vmem:[#allocation2] ss:$0 sm:$0xff] }
 0x7c2   :  { %1646 = vpow2.f32 %v1468_v46 }
 0x7c3   :  { %1648 = vpow2.f32 %v1469_v54 }
 0x7c4   :  { %1650 = vpow2.f32 %v1470_v42 }
 0x7c5   :  { %1652 = vtanh.f32 %v1243_v39 }
 0x7cc   :  { %v1647_v12 = vpop.eup %1646 }
 0x7cd   :  { %v1649_v50 = vpop.eup %1648  ;;  %v1252_v59 = vadd.f32 1.0, %v1647_v12 }
 0x7ce   :  { %v1258_v7 = vadd.f32 1.0, %v1649_v50  ;;  %v1651_v13 = vpop.eup %1650 }
 0x7cf   :  { %1654 = vrcp.f32 %v1252_v59  ;;  %v1653_v10 = vpop.eup %1652  ;;  %v1265_v26 = vadd.f32 1.0, %v1651_v13 }
 0x7d0   :  { %1656 = vrcp.f32 %v1258_v7 }
 0x7d1   :  { %1658 = vrcp.f32 %v1265_v26 }
 0x7d9   :  { %v1655_v60 = vpop.eup %1654 }
 0x7da   :  { %v1657_v24 = vpop.eup %1656  ;;  %v1269_v25 = vmul.f32 %v1655_v60, %v1653_v10 }
 0x7db   :  { %v1268_v37 = vmul.f32 %v1657_v24, %v2339_v35  ;;  %v1659_v11 = vpop.eup %1658 }
 0x7dd   :  { %v1270_v27 = vadd.f32 %v1269_v25, %v1268_v37 }
 0x7df   :  { %1660 = vtanh.f32 %v1270_v27 }
 0x7e9   :  { %v1661_v28 = vpop.eup %1660 }
 0x7ea   :  { %v1272_v29 = vmul.f32 %v1661_v28, %v1659_v11 }
 0x7ec   :  { %v1273_v30 = vpack.c.bf16 %v1272_v29, %v1272_v29 }
 0x7ee   :  { %1307 = vmatmul.mubr.bf16.vlgmr.msra.gmra.mrb[28].mxu0 %v1273_v30  ;;  %1348 = vmatmul.mubr.bf16.vlgmr.msra.gmra.mrb[28].mxu1 %v1273_v30 }
 0x8c1   :  { %v1308_v31 = vpop.f32.mrb[28].mxu0  ;;  %v1349_v8 = vpop.f32.mrb[28].mxu1 }
 0x8c2   :  { %v1309_v40 = vadd.f32 %v1308_v31, %v2480_v57  ;;  %v1310_v41 = vpop.f32.mrb[29].mxu0  ;;  %v1351_v56 = vpop.f32.mrb[29].mxu1  ;;  %v1350_v2 = vadd.f32 %v1349_v8, %v2483_v61 }
 0x8c3   :  { %v1311_v5 = vadd.f32 %v1310_v41, %v2481_v44  ;;  %v1312_v22 = vpop.f32.mrb[30].mxu0  ;;  %v1353_v23 = vpop.f32.mrb[30].mxu1  ;;  %v1352_v53 = vadd.f32 %v1351_v56, %v2482_v63 }
 0x8c4   :  { %v1471_v1 = vmul.f32 -1.442695, %v1309_v40  ;;  %v1313_v16 = vpop.f32.mrb[31].mxu0  ;;  %v1354_v58 = vpop.f32.mrb[31].mxu1 }
 0x8c5   :  { %v1472_v62 = vmul.f32 -1.442695, %v1311_v5  ;;  %v1473_v38 = vmul.f32 -1.442695, %v1352_v53 }
 0x8c6   :  { %1662 = vpow2.f32 %v1471_v1 }
 0x8c7   :  { %1664 = vpow2.f32 %v1472_v62 }
 0x8c8   :  { %1666 = vpow2.f32 %v1473_v38 }
 0x8c9   :  { %1668 = vtanh.f32 %v1350_v2 }
 0x8d0   :  { %v1663_v0 = vpop.eup %1662 }
 0x8d1   :  { %v1665_v45 = vpop.eup %1664  ;;  %v1359_v21 = vadd.f32 1.0, %v1663_v0 }
 0x8d2   :  { %v1365_v32 = vadd.f32 1.0, %v1665_v45  ;;  %v1667_v33 = vpop.eup %1666 }
 0x8d3   :  { %1670 = vrcp.f32 %v1359_v21  ;;  %v1669_v35 = vpop.eup %1668  ;;  %v1372_v55 = vadd.f32 1.0, %v1667_v33 }
 0x8d4   :  { %1672 = vrcp.f32 %v1365_v32 }
 0x8d5   :  { %1674 = vrcp.f32 %v1372_v55 }
 0x8dd   :  { %v1671_v34 = vpop.eup %1670 }
 0x8de   :  { %v1673_v36 = vpop.eup %1672  ;;  %v1376_v14 = vmul.f32 %v1671_v34, %v1669_v35 }
 0x8df   :  { %v1375_v4 = vmul.f32 %v1673_v36, %v1270_v27  ;;  %v1675_v18 = vpop.eup %1674 }
 0x8e1   :  { %v1377_v15 = vadd.f32 %v1376_v14, %v1375_v4 }
 0x8e3   :  { %1676 = vtanh.f32 %v1377_v15 }
 0x8ed   :  { %v1677_v9 = vpop.eup %1676 }
 0x8ee   :  { %v1379_v47 = vmul.f32 %v1677_v9, %v1675_v18 }
 0x8f0   :  { %v1387_v51 = vmul.f32 %v1474_v43, %v1379_v47 }
 0x8f2   :  { %v1389_v20 = vsel %vm1388_vm2, %v1387_v51, 0.0 }
 0x8f3   :  { %1390 = vadd.xlane.f32.xlu1 %v1389_v20 }
 0x980   :  { %v1391_v48 = vpop.xlane.xlu1 %1390 }
 0x981   :  { %v1399_v46 = vadd.f32 %v1475_v6, %v1391_v48 }
 0x983   :  { %1401 = vst.msk [vmem:[%s2395_s6] sm:$0x3] %vm1400_vm3, %v1399_v46 }
 0x984   :  { %1406 = vsyncpa [#allocation4], 1 }

</bundles_post_ra>
